<compile_context>
chip_gen: v7x
topology: tpu7x:2x2x1
jax: 0.10.0
libtpu: 0.0.40
codegen_flags: <defaults>
</compile_context>

<pallas_src>
import functools
import math

import jax
import jax.numpy as jnp
from jax import lax
from jax.experimental import pallas as pl
from jax.experimental.pallas import tpu as pltpu


def _residual_block_kernel(x_ref, w_ref, b_ref, scale_ref, shift_ref, o_ref,
                           xpad_ref, *, NB, H, W, K, p, CH, LPAD, approx_gelu):
    """One (channel tile, batch block) per grid step.

    x_ref     : (NB, H, W, TC)             input block (also the residual)
    w_ref     : (K*K, TC)                  depthwise taps, row = di*K + dj
    b_ref     : (1, TC)                    conv bias
    scale_ref : (1, TC)                    gamma / sqrt(var + eps)
    shift_ref : (1, TC)                    beta - mean * scale
    o_ref     : (NB, H, W, TC)
    xpad_ref  : (NB, H+2p, LPAD+W+LPAD, TC) zero-haloed copy of the tile
    """
    TC = x_ref.shape[-1]
    WP = LPAD + W + LPAD
    dt = xpad_ref.dtype

    # ---- zero-haloed tile: zero ONLY the halo strips, then copy interior ----
    # All strips start at 8-sublane-aligned W offsets -> unmasked stores.
    if p > 0:
        xpad_ref[:, 0:p, :, :] = jnp.zeros((NB, p, WP, TC), dt)              # top
        xpad_ref[:, p + H:p + H + p, :, :] = jnp.zeros((NB, p, WP, TC), dt)  # bottom
    xpad_ref[:, :, 0:LPAD, :] = jnp.zeros((NB, H + 2 * p, LPAD, TC), dt)     # left
    xpad_ref[:, :, LPAD + W:WP, :] = jnp.zeros((NB, H + 2 * p, LPAD, TC), dt)  # right
    xpad_ref[:, p:p + H, LPAD:LPAD + W, :] = x_ref[...]                      # interior

    bias = b_ref[0, :].astype(jnp.float32)
    scale = scale_ref[0, :].astype(jnp.float32)
    shift = shift_ref[0, :].astype(jnp.float32)
    inv_sqrt2 = 1.0 / math.sqrt(2.0)

    n_chunks = H // CH

    # ---- register-resident chunked accumulation -----------------------------
    # Each (CH, W, TC) output chunk receives all K*K taps before being stored
    # once: one store pass per chunk instead of 2*K*K full-tile RMW passes.
    for n in range(NB):                                   # NB is small & static
        def chunk_body(c, carry, n=n):
            h0 = pl.multiple_of(c * CH, CH)
            acc = jnp.broadcast_to(bias, (CH, W, TC))     # bias-initialised acc
            for dj in range(K):
                j0 = LPAD - p + dj                        # static W offset
                for di in range(K):
                    tap = w_ref[di * K + dj, :].astype(jnp.float32)
                    win = xpad_ref[n, pl.ds(h0 + di, CH), j0:j0 + W, :]
                    acc = acc + win.astype(jnp.float32) * tap
            if approx_gelu:
                g = jax.nn.gelu(acc, approximate=True)    # tanh approx (option)
            else:
                # exact erf GELU — parity with PyTorch nn.GELU default
                g = 0.5 * acc * (1.0 + lax.erf(acc * inv_sqrt2))
            res = x_ref[n, pl.ds(h0, CH), :, :].astype(jnp.float32)
            y = g * scale + shift + res                   # folded BN + residual
            o_ref[n, pl.ds(h0, CH), :, :] = y.astype(o_ref.dtype)
            return carry

        lax.fori_loop(0, n_chunks, chunk_body, 0, unroll=n_chunks <= 8)


def _pick_nb(N, n_c, block_bytes_per_image):
    """Largest batch block (<=4, divides N, <=4 MiB/block) keeping >=4 steps."""
    for nb in range(min(N, 4), 0, -1):
        if N % nb:
            continue
        if nb * block_bytes_per_image > (4 << 20):
            continue
        if (N // nb) * n_c >= 4:
            return nb
    return 1


def residual_convmixer_block(x_nchw, w, b, gamma, beta, mean, var, *,
                             eps=1e-5, approximate_gelu=False):
    """x_nchw: (N, C, H, W).  w: (C, K, K) depthwise weights.  Returns NCHW."""
    N, C, H, W = x_nchw.shape
    K = w.shape[-1]
    # TODO(synk): even kernel sizes need asymmetric "same" padding; only odd K
    # (ConvMixer uses odd K) is supported here.
    assert K % 2 == 1, "only odd kernel sizes supported (padding='same')"
    p = (K - 1) // 2

    # Fold BatchNorm (eval mode, running stats) into a single scale/shift.
    scale = gamma / jnp.sqrt(var + eps)
    shift = beta - mean * scale

    # Layout: NCHW -> NHWC (channels on the 128-lane axis, W on sublanes).
    x = jnp.transpose(x_nchw, (0, 2, 3, 1))
    w_flat = jnp.transpose(w, (1, 2, 0)).reshape(K * K, C)

    # Lane-dense channel axis: round C up to a multiple of 128 (no-op for real
    # ConvMixer widths).  Padded channels compute exact zeros and are sliced off.
    TC = 128
    C_pad = ((C + TC - 1) // TC) * TC
    if C_pad != C:
        cpad = C_pad - C
        x = jnp.pad(x, ((0, 0), (0, 0), (0, 0), (0, cpad)))
        w_flat = jnp.pad(w_flat, ((0, 0), (0, cpad)))
        b = jnp.pad(b, (0, cpad))
        scale = jnp.pad(scale, (0, cpad))
        shift = jnp.pad(shift, (0, cpad))

    b2 = b.reshape(1, C_pad).astype(jnp.float32)
    sc2 = scale.reshape(1, C_pad).astype(jnp.float32)
    sh2 = shift.reshape(1, C_pad).astype(jnp.float32)

    n_c = C_pad // TC
    NB = _pick_nb(N, n_c, H * W * TC * x.dtype.itemsize)
    # Chunk height: keep the f32 accumulator chunk around <=16 vregs (~64 KiB)
    # so it stays register-resident; must divide H.
    CH = math.gcd(H, max(1, min(8, 128 // max(W, 1))))
    # Sublane-aligned left pad (>= p, multiple of 8) for unmasked interior stores.
    LPAD = max(8, ((p + 7) // 8) * 8)

    kernel = functools.partial(_residual_block_kernel, NB=NB, H=H, W=W, K=K,
                               p=p, CH=CH, LPAD=LPAD,
                               approx_gelu=approximate_gelu)

    per_chan = pl.BlockSpec((1, TC), lambda c, n: (0, c))
    x_spec = pl.BlockSpec((NB, H, W, TC), lambda c, n: (n, 0, 0, c))

    out_nhwc = pl.pallas_call(
        kernel,
        out_shape=jax.ShapeDtypeStruct((N, H, W, C_pad), x.dtype),
        grid_spec=pltpu.PrefetchScalarGridSpec(
            num_scalar_prefetch=0,
            # Channel tile outermost: per-channel parameter blocks keep the
            # same block index across the inner batch steps (no re-DMA).
            grid=(n_c, N // NB),
            in_specs=[
                x_spec,
                pl.BlockSpec((K * K, TC), lambda c, n: (0, c)),
                per_chan, per_chan, per_chan,
            ],
            out_specs=x_spec,
            scratch_shapes=[
                pltpu.VMEM((NB, H + 2 * p, LPAD + W + LPAD, TC), x.dtype),
            ],
        ),
        compiler_params=pltpu.CompilerParams(
            dimension_semantics=("parallel", "parallel")),
    )(x, w_flat, b2, sc2, sh2)

    out = out_nhwc[..., :C] if C_pad != C else out_nhwc
    return jnp.transpose(out, (0, 3, 1, 2))                    # back to NCHW


def _reference(x_nchw, w, b, gamma, beta, mean, var, eps=1e-5):
    """Pure-JAX reference of Residual(Conv2d(groups=dim) -> GELU -> BN)."""
    N, C, H, W = x_nchw.shape
    K = w.shape[-1]
    conv = lax.conv_general_dilated(
        x_nchw, w.reshape(C, 1, K, K),
        window_strides=(1, 1), padding="SAME",
        dimension_numbers=("NCHW", "OIHW", "NCHW"),
        feature_group_count=C)
    conv = conv + b[None, :, None, None]
    g = 0.5 * conv * (1.0 + lax.erf(conv / math.sqrt(2.0)))
    y = ((g - mean[None, :, None, None]) /
         jnp.sqrt(var[None, :, None, None] + eps)
         * gamma[None, :, None, None] + beta[None, :, None, None])
    return y + x_nchw


if __name__ == "__main__":
    key = jax.random.PRNGKey(0)
    N, C, H, W, K = 2, 32, 16, 16, 3

    k_x, k_w, k_b, k_g, k_be, k_m, k_v = jax.random.split(key, 7)
    x = jax.random.normal(k_x, (N, C, H, W), jnp.float32)
    w = jax.random.normal(k_w, (C, K, K), jnp.float32) * 0.1
    b = jax.random.normal(k_b, (C,), jnp.float32) * 0.1
    gamma = 1.0 + 0.1 * jax.random.normal(k_g, (C,), jnp.float32)
    beta = 0.1 * jax.random.normal(k_be, (C,), jnp.float32)
    mean = 0.1 * jax.random.normal(k_m, (C,), jnp.float32)
    var = jnp.abs(jax.random.normal(k_v, (C,), jnp.float32)) + 0.5

    out = residual_convmixer_block(x, w, b, gamma, beta, mean, var)
    out = jax.block_until_ready(out)

    ref = _reference(x, w, b, gamma, beta, mean, var)
    assert out.shape == (N, C, H, W)
    err = float(jnp.max(jnp.abs(out - ref)))
    assert jnp.allclose(out, ref, atol=1e-4, rtol=1e-4), err
    print("KERNEL_OK")
</pallas_src>

<mosaic_0001>
module attributes {stable_mosaic.version = 11 : i64} {
  func.func @_residual_block_kernel(%arg0: i32, %arg1: i32, %arg2: memref<1x16x16x128xf32, #tpu.memory_space<vmem>>, %arg3: memref<9x128xf32, #tpu.memory_space<vmem>>, %arg4: memref<1x128xf32, #tpu.memory_space<vmem>>, %arg5: memref<1x128xf32, #tpu.memory_space<vmem>>, %arg6: memref<1x128xf32, #tpu.memory_space<vmem>>, %arg7: memref<1x16x16x128xf32, #tpu.memory_space<vmem>>, %arg8: memref<1x18x32x128xf32, #tpu.memory_space<vmem>>) attributes {dimension_semantics = [#tpu.dimension_semantics<parallel>, #tpu.dimension_semantics<parallel>], iteration_bounds = array<i64: 1, 2>, scalar_prefetch = 0 : i64, scratch_operands = 1 : i64, tpu.core_type = #tpu.core_type<tc>, window_params = [{transform_indices = @transform_0, window_bounds = array<i64: 1, 16, 16, 128>}, {transform_indices = @transform_1, window_bounds = array<i64: 9, 128>}, {transform_indices = @transform_2, window_bounds = array<i64: 1, 128>}, {transform_indices = @transform_3, window_bounds = array<i64: 1, 128>}, {transform_indices = @transform_4, window_bounds = array<i64: 1, 128>}, {transform_indices = @transform_5, window_bounds = array<i64: 1, 16, 16, 128>}]} {
    %cst = arith.constant 0.000000e+00 : f32
    %0 = vector.broadcast %cst : f32 to vector<1x1x32x128xf32>
    %c0 = arith.constant 0 : index
    %c0_0 = arith.constant 0 : index
    %c0_1 = arith.constant 0 : index
    %c0_2 = arith.constant 0 : index
    %1 = vector.load %arg8[%c0, %c0_0, %c0_1, %c0_2] : memref<1x18x32x128xf32, #tpu.memory_space<vmem>>, vector<1x1x32x128xf32>
    tpu.vector_store %arg8[%c0, %c0_0, %c0_1, %c0_2], %0 {strides = array<i32>} : memref<1x18x32x128xf32, #tpu.memory_space<vmem>>, vector<1x1x32x128xf32>,
    %cst_3 = arith.constant 0.000000e+00 : f32
    %2 = vector.broadcast %cst_3 : f32 to vector<1x1x32x128xf32>
    %c0_4 = arith.constant 0 : index
    %c17 = arith.constant 17 : index
    %c0_5 = arith.constant 0 : index
    %c0_6 = arith.constant 0 : index
    %3 = vector.load %arg8[%c0_4, %c17, %c0_5, %c0_6] : memref<1x18x32x128xf32, #tpu.memory_space<vmem>>, vector<1x1x32x128xf32>
    tpu.vector_store %arg8[%c0_4, %c17, %c0_5, %c0_6], %2 {strides = array<i32>} : memref<1x18x32x128xf32, #tpu.memory_space<vmem>>, vector<1x1x32x128xf32>,
    %cst_7 = arith.constant 0.000000e+00 : f32
    %4 = vector.broadcast %cst_7 : f32 to vector<1x18x8x128xf32>
    %c0_8 = arith.constant 0 : index
    %c0_9 = arith.constant 0 : index
    %c0_10 = arith.constant 0 : index
    %c0_11 = arith.constant 0 : index
    %5 = vector.load %arg8[%c0_8, %c0_9, %c0_10, %c0_11] : memref<1x18x32x128xf32, #tpu.memory_space<vmem>>, vector<1x18x8x128xf32>
    tpu.vector_store %arg8[%c0_8, %c0_9, %c0_10, %c0_11], %4 {strides = array<i32>} : memref<1x18x32x128xf32, #tpu.memory_space<vmem>>, vector<1x18x8x128xf32>,
    %cst_12 = arith.constant 0.000000e+00 : f32
    %6 = vector.broadcast %cst_12 : f32 to vector<1x18x8x128xf32>
    %c0_13 = arith.constant 0 : index
    %c0_14 = arith.constant 0 : index
    %c24 = arith.constant 24 : index
    %c0_15 = arith.constant 0 : index
    %7 = vector.load %arg8[%c0_13, %c0_14, %c24, %c0_15] : memref<1x18x32x128xf32, #tpu.memory_space<vmem>>, vector<1x18x8x128xf32>
    tpu.vector_store %arg8[%c0_13, %c0_14, %c24, %c0_15], %6 {strides = array<i32>} : memref<1x18x32x128xf32, #tpu.memory_space<vmem>>, vector<1x18x8x128xf32>,
    %c0_16 = arith.constant 0 : index
    %c0_17 = arith.constant 0 : index
    %c0_18 = arith.constant 0 : index
    %c0_19 = arith.constant 0 : index
    %8 = vector.load %arg2[%c0_16, %c0_17, %c0_18, %c0_19] : memref<1x16x16x128xf32, #tpu.memory_space<vmem>>, vector<1x16x16x128xf32>
    %c0_20 = arith.constant 0 : index
    %c1 = arith.constant 1 : index
    %c8 = arith.constant 8 : index
    %c0_21 = arith.constant 0 : index
    %9 = vector.load %arg8[%c0_20, %c1, %c8, %c0_21] : memref<1x18x32x128xf32, #tpu.memory_space<vmem>>, vector<1x16x16x128xf32>
    tpu.vector_store %arg8[%c0_20, %c1, %c8, %c0_21], %8 {strides = array<i32>} : memref<1x18x32x128xf32, #tpu.memory_space<vmem>>, vector<1x16x16x128xf32>,
    %c0_22 = arith.constant 0 : index
    %c0_23 = arith.constant 0 : index
    %10 = vector.load %arg4[%c0_22, %c0_23] : memref<1x128xf32, #tpu.memory_space<vmem>>, vector<1x128xf32>
    %11 = vector.shape_cast %10 : vector<1x128xf32> to vector<128xf32>
    %c0_24 = arith.constant 0 : index
    %c0_25 = arith.constant 0 : index
    %12 = vector.load %arg5[%c0_24, %c0_25] : memref<1x128xf32, #tpu.memory_space<vmem>>, vector<1x128xf32>
    %13 = vector.shape_cast %12 : vector<1x128xf32> to vector<128xf32>
    %c0_26 = arith.constant 0 : index
    %c0_27 = arith.constant 0 : index
    %14 = vector.load %arg6[%c0_26, %c0_27] : memref<1x128xf32, #tpu.memory_space<vmem>>, vector<1x128xf32>
    %15 = vector.shape_cast %14 : vector<1x128xf32> to vector<128xf32>
    %c0_i32 = arith.constant 0 : i32
    %c8_i32 = arith.constant 8 : i32
    %16 = arith.muli %c0_i32, %c8_i32 : i32
    %17 = tpu.assume_multiple %16, 8 : i32
    %18 = vector.shape_cast %11 : vector<128xf32> to vector<1x1x128xf32>
    %19 = vector.broadcast %18 : vector<1x1x128xf32> to vector<8x16x128xf32>
    %c0_28 = arith.constant 0 : index
    %c0_29 = arith.constant 0 : index
    %20 = vector.load %arg3[%c0_28, %c0_29] : memref<9x128xf32, #tpu.memory_space<vmem>>, vector<1x128xf32>
    %21 = vector.shape_cast %20 : vector<1x128xf32> to vector<128xf32>
    %c0_i32_30 = arith.constant 0 : i32
    %22 = arith.addi %17, %c0_i32_30 : i32
    %c0_31 = arith.constant 0 : index
    %23 = arith.index_cast %22 : i32 to index
    %c7 = arith.constant 7 : index
    %c0_32 = arith.constant 0 : index
    %24 = vector.load %arg8[%c0_31, %23, %c7, %c0_32] : memref<1x18x32x128xf32, #tpu.memory_space<vmem>>, vector<1x8x16x128xf32>
    %25 = vector.shape_cast %24 : vector<1x8x16x128xf32> to vector<8x16x128xf32>
    %26 = vector.shape_cast %21 : vector<128xf32> to vector<1x1x128xf32>
    %27 = vector.broadcast %26 : vector<1x1x128xf32> to vector<8x16x128xf32>
    %28 = arith.mulf %25, %27 : vector<8x16x128xf32>
    %29 = arith.addf %19, %28 : vector<8x16x128xf32>
    %c3 = arith.constant 3 : index
    %c0_33 = arith.constant 0 : index
    %30 = vector.load %arg3[%c3, %c0_33] : memref<9x128xf32, #tpu.memory_space<vmem>>, vector<1x128xf32>
    %31 = vector.shape_cast %30 : vector<1x128xf32> to vector<128xf32>
    %c1_i32 = arith.constant 1 : i32
    %32 = arith.addi %17, %c1_i32 : i32
    %c0_34 = arith.constant 0 : index
    %33 = arith.index_cast %32 : i32 to index
    %c7_35 = arith.constant 7 : index
    %c0_36 = arith.constant 0 : index
    %34 = vector.load %arg8[%c0_34, %33, %c7_35, %c0_36] : memref<1x18x32x128xf32, #tpu.memory_space<vmem>>, vector<1x8x16x128xf32>
    %35 = vector.shape_cast %34 : vector<1x8x16x128xf32> to vector<8x16x128xf32>
    %36 = vector.shape_cast %31 : vector<128xf32> to vector<1x1x128xf32>
    %37 = vector.broadcast %36 : vector<1x1x128xf32> to vector<8x16x128xf32>
    %38 = arith.mulf %35, %37 : vector<8x16x128xf32>
    %39 = arith.addf %29, %38 : vector<8x16x128xf32>
    %c6 = arith.constant 6 : index
    %c0_37 = arith.constant 0 : index
    %40 = vector.load %arg3[%c6, %c0_37] : memref<9x128xf32, #tpu.memory_space<vmem>>, vector<1x128xf32>
    %41 = vector.shape_cast %40 : vector<1x128xf32> to vector<128xf32>
    %c2_i32 = arith.constant 2 : i32
    %42 = arith.addi %17, %c2_i32 : i32
    %c0_38 = arith.constant 0 : index
    %43 = arith.index_cast %42 : i32 to index
    %c7_39 = arith.constant 7 : index
    %c0_40 = arith.constant 0 : index
    %44 = vector.load %arg8[%c0_38, %43, %c7_39, %c0_40] : memref<1x18x32x128xf32, #tpu.memory_space<vmem>>, vector<1x8x16x128xf32>
    %45 = vector.shape_cast %44 : vector<1x8x16x128xf32> to vector<8x16x128xf32>
    %46 = vector.shape_cast %41 : vector<128xf32> to vector<1x1x128xf32>
    %47 = vector.broadcast %46 : vector<1x1x128xf32> to vector<8x16x128xf32>
    %48 = arith.mulf %45, %47 : vector<8x16x128xf32>
    %49 = arith.addf %39, %48 : vector<8x16x128xf32>
    %c1_41 = arith.constant 1 : index
    %c0_42 = arith.constant 0 : index
    %50 = vector.load %arg3[%c1_41, %c0_42] : memref<9x128xf32, #tpu.memory_space<vmem>>, vector<1x128xf32>
    %51 = vector.shape_cast %50 : vector<1x128xf32> to vector<128xf32>
    %c0_i32_43 = arith.constant 0 : i32
    %52 = arith.addi %17, %c0_i32_43 : i32
    %c0_44 = arith.constant 0 : index
    %53 = arith.index_cast %52 : i32 to index
    %c8_45 = arith.constant 8 : index
    %c0_46 = arith.constant 0 : index
    %54 = vector.load %arg8[%c0_44, %53, %c8_45, %c0_46] : memref<1x18x32x128xf32, #tpu.memory_space<vmem>>, vector<1x8x16x128xf32>
    %55 = vector.shape_cast %54 : vector<1x8x16x128xf32> to vector<8x16x128xf32>
    %56 = vector.shape_cast %51 : vector<128xf32> to vector<1x1x128xf32>
    %57 = vector.broadcast %56 : vector<1x1x128xf32> to vector<8x16x128xf32>
    %58 = arith.mulf %55, %57 : vector<8x16x128xf32>
    %59 = arith.addf %49, %58 : vector<8x16x128xf32>
    %c4 = arith.constant 4 : index
    %c0_47 = arith.constant 0 : index
    %60 = vector.load %arg3[%c4, %c0_47] : memref<9x128xf32, #tpu.memory_space<vmem>>, vector<1x128xf32>
    %61 = vector.shape_cast %60 : vector<1x128xf32> to vector<128xf32>
    %c1_i32_48 = arith.constant 1 : i32
    %62 = arith.addi %17, %c1_i32_48 : i32
    %c0_49 = arith.constant 0 : index
    %63 = arith.index_cast %62 : i32 to index
    %c8_50 = arith.constant 8 : index
    %c0_51 = arith.constant 0 : index
    %64 = vector.load %arg8[%c0_49, %63, %c8_50, %c0_51] : memref<1x18x32x128xf32, #tpu.memory_space<vmem>>, vector<1x8x16x128xf32>
    %65 = vector.shape_cast %64 : vector<1x8x16x128xf32> to vector<8x16x128xf32>
    %66 = vector.shape_cast %61 : vector<128xf32> to vector<1x1x128xf32>
    %67 = vector.broadcast %66 : vector<1x1x128xf32> to vector<8x16x128xf32>
    %68 = arith.mulf %65, %67 : vector<8x16x128xf32>
    %69 = arith.addf %59, %68 : vector<8x16x128xf32>
    %c7_52 = arith.constant 7 : index
    %c0_53 = arith.constant 0 : index
    %70 = vector.load %arg3[%c7_52, %c0_53] : memref<9x128xf32, #tpu.memory_space<vmem>>, vector<1x128xf32>
    %71 = vector.shape_cast %70 : vector<1x128xf32> to vector<128xf32>
    %c2_i32_54 = arith.constant 2 : i32
    %72 = arith.addi %17, %c2_i32_54 : i32
    %c0_55 = arith.constant 0 : index
    %73 = arith.index_cast %72 : i32 to index
    %c8_56 = arith.constant 8 : index
    %c0_57 = arith.constant 0 : index
    %74 = vector.load %arg8[%c0_55, %73, %c8_56, %c0_57] : memref<1x18x32x128xf32, #tpu.memory_space<vmem>>, vector<1x8x16x128xf32>
    %75 = vector.shape_cast %74 : vector<1x8x16x128xf32> to vector<8x16x128xf32>
    %76 = vector.shape_cast %71 : vector<128xf32> to vector<1x1x128xf32>
    %77 = vector.broadcast %76 : vector<1x1x128xf32> to vector<8x16x128xf32>
    %78 = arith.mulf %75, %77 : vector<8x16x128xf32>
    %79 = arith.addf %69, %78 : vector<8x16x128xf32>
    %c2 = arith.constant 2 : index
    %c0_58 = arith.constant 0 : index
    %80 = vector.load %arg3[%c2, %c0_58] : memref<9x128xf32, #tpu.memory_space<vmem>>, vector<1x128xf32>
    %81 = vector.shape_cast %80 : vector<1x128xf32> to vector<128xf32>
    %c0_i32_59 = arith.constant 0 : i32
    %82 = arith.addi %17, %c0_i32_59 : i32
    %c0_60 = arith.constant 0 : index
    %83 = arith.index_cast %82 : i32 to index
    %c9 = arith.constant 9 : index
    %c0_61 = arith.constant 0 : index
    %84 = vector.load %arg8[%c0_60, %83, %c9, %c0_61] : memref<1x18x32x128xf32, #tpu.memory_space<vmem>>, vector<1x8x16x128xf32>
    %85 = vector.shape_cast %84 : vector<1x8x16x128xf32> to vector<8x16x128xf32>
    %86 = vector.shape_cast %81 : vector<128xf32> to vector<1x1x128xf32>
    %87 = vector.broadcast %86 : vector<1x1x128xf32> to vector<8x16x128xf32>
    %88 = arith.mulf %85, %87 : vector<8x16x128xf32>
    %89 = arith.addf %79, %88 : vector<8x16x128xf32>
    %c5 = arith.constant 5 : index
    %c0_62 = arith.constant 0 : index
    %90 = vector.load %arg3[%c5, %c0_62] : memref<9x128xf32, #tpu.memory_space<vmem>>, vector<1x128xf32>
    %91 = vector.shape_cast %90 : vector<1x128xf32> to vector<128xf32>
    %c1_i32_63 = arith.constant 1 : i32
    %92 = arith.addi %17, %c1_i32_63 : i32
    %c0_64 = arith.constant 0 : index
    %93 = arith.index_cast %92 : i32 to index
    %c9_65 = arith.constant 9 : index
    %c0_66 = arith.constant 0 : index
    %94 = vector.load %arg8[%c0_64, %93, %c9_65, %c0_66] : memref<1x18x32x128xf32, #tpu.memory_space<vmem>>, vector<1x8x16x128xf32>
    %95 = vector.shape_cast %94 : vector<1x8x16x128xf32> to vector<8x16x128xf32>
    %96 = vector.shape_cast %91 : vector<128xf32> to vector<1x1x128xf32>
    %97 = vector.broadcast %96 : vector<1x1x128xf32> to vector<8x16x128xf32>
    %98 = arith.mulf %95, %97 : vector<8x16x128xf32>
    %99 = arith.addf %89, %98 : vector<8x16x128xf32>
    %c8_67 = arith.constant 8 : index
    %c0_68 = arith.constant 0 : index
    %100 = vector.load %arg3[%c8_67, %c0_68] : memref<9x128xf32, #tpu.memory_space<vmem>>, vector<1x128xf32>
    %101 = vector.shape_cast %100 : vector<1x128xf32> to vector<128xf32>
    %c2_i32_69 = arith.constant 2 : i32
    %102 = arith.addi %17, %c2_i32_69 : i32
    %c0_70 = arith.constant 0 : index
    %103 = arith.index_cast %102 : i32 to index
    %c9_71 = arith.constant 9 : index
    %c0_72 = arith.constant 0 : index
    %104 = vector.load %arg8[%c0_70, %103, %c9_71, %c0_72] : memref<1x18x32x128xf32, #tpu.memory_space<vmem>>, vector<1x8x16x128xf32>
    %105 = vector.shape_cast %104 : vector<1x8x16x128xf32> to vector<8x16x128xf32>
    %106 = vector.shape_cast %101 : vector<128xf32> to vector<1x1x128xf32>
    %107 = vector.broadcast %106 : vector<1x1x128xf32> to vector<8x16x128xf32>
    %108 = arith.mulf %105, %107 : vector<8x16x128xf32>
    %109 = arith.addf %99, %108 : vector<8x16x128xf32>
    %cst_73 = arith.constant 5.000000e-01 : f32
    %110 = vector.broadcast %cst_73 : f32 to vector<8x16x128xf32>
    %111 = arith.mulf %110, %109 : vector<8x16x128xf32>
    %cst_74 = arith.constant 0.707106769 : f32
    %112 = vector.broadcast %cst_74 : f32 to vector<8x16x128xf32>
    %113 = arith.mulf %109, %112 : vector<8x16x128xf32>
    %114 = math.erf %113 : vector<8x16x128xf32>
    %cst_75 = arith.constant 1.000000e+00 : f32
    %115 = vector.broadcast %cst_75 : f32 to vector<8x16x128xf32>
    %116 = arith.addf %115, %114 : vector<8x16x128xf32>
    %117 = arith.mulf %111, %116 : vector<8x16x128xf32>
    %c0_76 = arith.constant 0 : index
    %118 = arith.index_cast %17 : i32 to index
    %c0_77 = arith.constant 0 : index
    %c0_78 = arith.constant 0 : index
    %119 = vector.load %arg2[%c0_76, %118, %c0_77, %c0_78] : memref<1x16x16x128xf32, #tpu.memory_space<vmem>>, vector<1x8x16x128xf32>
    %120 = vector.shape_cast %119 : vector<1x8x16x128xf32> to vector<8x16x128xf32>
    %121 = vector.shape_cast %13 : vector<128xf32> to vector<1x1x128xf32>
    %122 = vector.broadcast %121 : vector<1x1x128xf32> to vector<8x16x128xf32>
    %123 = arith.mulf %117, %122 : vector<8x16x128xf32>
    %124 = vector.shape_cast %15 : vector<128xf32> to vector<1x1x128xf32>
    %125 = vector.broadcast %124 : vector<1x1x128xf32> to vector<8x16x128xf32>
    %126 = arith.addf %123, %125 : vector<8x16x128xf32>
    %127 = arith.addf %126, %120 : vector<8x16x128xf32>
    %c0_79 = arith.constant 0 : index
    %128 = arith.index_cast %17 : i32 to index
    %c0_80 = arith.constant 0 : index
    %c0_81 = arith.constant 0 : index
    %129 = vector.load %arg7[%c0_79, %128, %c0_80, %c0_81] : memref<1x16x16x128xf32, #tpu.memory_space<vmem>>, vector<1x8x16x128xf32>
    %130 = vector.shape_cast %129 : vector<1x8x16x128xf32> to vector<8x16x128xf32>
    %131 = vector.shape_cast %127 : vector<8x16x128xf32> to vector<1x8x16x128xf32>
    tpu.vector_store %arg7[%c0_79, %128, %c0_80, %c0_81], %131 {strides = array<i32>} : memref<1x16x16x128xf32, #tpu.memory_space<vmem>>, vector<1x8x16x128xf32>,
    %c1_i32_82 = arith.constant 1 : i32
    %c8_i32_83 = arith.constant 8 : i32
    %132 = arith.muli %c1_i32_82, %c8_i32_83 : i32
    %133 = tpu.assume_multiple %132, 8 : i32
    %134 = vector.shape_cast %11 : vector<128xf32> to vector<1x1x128xf32>
    %135 = vector.broadcast %134 : vector<1x1x128xf32> to vector<8x16x128xf32>
    %c0_84 = arith.constant 0 : index
    %c0_85 = arith.constant 0 : index
    %136 = vector.load %arg3[%c0_84, %c0_85] : memref<9x128xf32, #tpu.memory_space<vmem>>, vector<1x128xf32>
    %137 = vector.shape_cast %136 : vector<1x128xf32> to vector<128xf32>
    %c0_i32_86 = arith.constant 0 : i32
    %138 = arith.addi %133, %c0_i32_86 : i32
    %c0_87 = arith.constant 0 : index
    %139 = arith.index_cast %138 : i32 to index
    %c7_88 = arith.constant 7 : index
    %c0_89 = arith.constant 0 : index
    %140 = vector.load %arg8[%c0_87, %139, %c7_88, %c0_89] : memref<1x18x32x128xf32, #tpu.memory_space<vmem>>, vector<1x8x16x128xf32>
    %141 = vector.shape_cast %140 : vector<1x8x16x128xf32> to vector<8x16x128xf32>
    %142 = vector.shape_cast %137 : vector<128xf32> to vector<1x1x128xf32>
    %143 = vector.broadcast %142 : vector<1x1x128xf32> to vector<8x16x128xf32>
    %144 = arith.mulf %141, %143 : vector<8x16x128xf32>
    %145 = arith.addf %135, %144 : vector<8x16x128xf32>
    %c3_90 = arith.constant 3 : index
    %c0_91 = arith.constant 0 : index
    %146 = vector.load %arg3[%c3_90, %c0_91] : memref<9x128xf32, #tpu.memory_space<vmem>>, vector<1x128xf32>
    %147 = vector.shape_cast %146 : vector<1x128xf32> to vector<128xf32>
    %c1_i32_92 = arith.constant 1 : i32
    %148 = arith.addi %133, %c1_i32_92 : i32
    %c0_93 = arith.constant 0 : index
    %149 = arith.index_cast %148 : i32 to index
    %c7_94 = arith.constant 7 : index
    %c0_95 = arith.constant 0 : index
    %150 = vector.load %arg8[%c0_93, %149, %c7_94, %c0_95] : memref<1x18x32x128xf32, #tpu.memory_space<vmem>>, vector<1x8x16x128xf32>
    %151 = vector.shape_cast %150 : vector<1x8x16x128xf32> to vector<8x16x128xf32>
    %152 = vector.shape_cast %147 : vector<128xf32> to vector<1x1x128xf32>
    %153 = vector.broadcast %152 : vector<1x1x128xf32> to vector<8x16x128xf32>
    %154 = arith.mulf %151, %153 : vector<8x16x128xf32>
    %155 = arith.addf %145, %154 : vector<8x16x128xf32>
    %c6_96 = arith.constant 6 : index
    %c0_97 = arith.constant 0 : index
    %156 = vector.load %arg3[%c6_96, %c0_97] : memref<9x128xf32, #tpu.memory_space<vmem>>, vector<1x128xf32>
    %157 = vector.shape_cast %156 : vector<1x128xf32> to vector<128xf32>
    %c2_i32_98 = arith.constant 2 : i32
    %158 = arith.addi %133, %c2_i32_98 : i32
    %c0_99 = arith.constant 0 : index
    %159 = arith.index_cast %158 : i32 to index
    %c7_100 = arith.constant 7 : index
    %c0_101 = arith.constant 0 : index
    %160 = vector.load %arg8[%c0_99, %159, %c7_100, %c0_101] : memref<1x18x32x128xf32, #tpu.memory_space<vmem>>, vector<1x8x16x128xf32>
    %161 = vector.shape_cast %160 : vector<1x8x16x128xf32> to vector<8x16x128xf32>
    %162 = vector.shape_cast %157 : vector<128xf32> to vector<1x1x128xf32>
    %163 = vector.broadcast %162 : vector<1x1x128xf32> to vector<8x16x128xf32>
    %164 = arith.mulf %161, %163 : vector<8x16x128xf32>
    %165 = arith.addf %155, %164 : vector<8x16x128xf32>
    %c1_102 = arith.constant 1 : index
    %c0_103 = arith.constant 0 : index
    %166 = vector.load %arg3[%c1_102, %c0_103] : memref<9x128xf32, #tpu.memory_space<vmem>>, vector<1x128xf32>
    %167 = vector.shape_cast %166 : vector<1x128xf32> to vector<128xf32>
    %c0_i32_104 = arith.constant 0 : i32
    %168 = arith.addi %133, %c0_i32_104 : i32
    %c0_105 = arith.constant 0 : index
    %169 = arith.index_cast %168 : i32 to index
    %c8_106 = arith.constant 8 : index
    %c0_107 = arith.constant 0 : index
    %170 = vector.load %arg8[%c0_105, %169, %c8_106, %c0_107] : memref<1x18x32x128xf32, #tpu.memory_space<vmem>>, vector<1x8x16x128xf32>
    %171 = vector.shape_cast %170 : vector<1x8x16x128xf32> to vector<8x16x128xf32>
    %172 = vector.shape_cast %167 : vector<128xf32> to vector<1x1x128xf32>
    %173 = vector.broadcast %172 : vector<1x1x128xf32> to vector<8x16x128xf32>
    %174 = arith.mulf %171, %173 : vector<8x16x128xf32>
    %175 = arith.addf %165, %174 : vector<8x16x128xf32>
    %c4_108 = arith.constant 4 : index
    %c0_109 = arith.constant 0 : index
    %176 = vector.load %arg3[%c4_108, %c0_109] : memref<9x128xf32, #tpu.memory_space<vmem>>, vector<1x128xf32>
    %177 = vector.shape_cast %176 : vector<1x128xf32> to vector<128xf32>
    %c1_i32_110 = arith.constant 1 : i32
    %178 = arith.addi %133, %c1_i32_110 : i32
    %c0_111 = arith.constant 0 : index
    %179 = arith.index_cast %178 : i32 to index
    %c8_112 = arith.constant 8 : index
    %c0_113 = arith.constant 0 : index
    %180 = vector.load %arg8[%c0_111, %179, %c8_112, %c0_113] : memref<1x18x32x128xf32, #tpu.memory_space<vmem>>, vector<1x8x16x128xf32>
    %181 = vector.shape_cast %180 : vector<1x8x16x128xf32> to vector<8x16x128xf32>
    %182 = vector.shape_cast %177 : vector<128xf32> to vector<1x1x128xf32>
    %183 = vector.broadcast %182 : vector<1x1x128xf32> to vector<8x16x128xf32>
    %184 = arith.mulf %181, %183 : vector<8x16x128xf32>
    %185 = arith.addf %175, %184 : vector<8x16x128xf32>
    %c7_114 = arith.constant 7 : index
    %c0_115 = arith.constant 0 : index
    %186 = vector.load %arg3[%c7_114, %c0_115] : memref<9x128xf32, #tpu.memory_space<vmem>>, vector<1x128xf32>
    %187 = vector.shape_cast %186 : vector<1x128xf32> to vector<128xf32>
    %c2_i32_116 = arith.constant 2 : i32
    %188 = arith.addi %133, %c2_i32_116 : i32
    %c0_117 = arith.constant 0 : index
    %189 = arith.index_cast %188 : i32 to index
    %c8_118 = arith.constant 8 : index
    %c0_119 = arith.constant 0 : index
    %190 = vector.load %arg8[%c0_117, %189, %c8_118, %c0_119] : memref<1x18x32x128xf32, #tpu.memory_space<vmem>>, vector<1x8x16x128xf32>
    %191 = vector.shape_cast %190 : vector<1x8x16x128xf32> to vector<8x16x128xf32>
    %192 = vector.shape_cast %187 : vector<128xf32> to vector<1x1x128xf32>
    %193 = vector.broadcast %192 : vector<1x1x128xf32> to vector<8x16x128xf32>
    %194 = arith.mulf %191, %193 : vector<8x16x128xf32>
    %195 = arith.addf %185, %194 : vector<8x16x128xf32>
    %c2_120 = arith.constant 2 : index
    %c0_121 = arith.constant 0 : index
    %196 = vector.load %arg3[%c2_120, %c0_121] : memref<9x128xf32, #tpu.memory_space<vmem>>, vector<1x128xf32>
    %197 = vector.shape_cast %196 : vector<1x128xf32> to vector<128xf32>
    %c0_i32_122 = arith.constant 0 : i32
    %198 = arith.addi %133, %c0_i32_122 : i32
    %c0_123 = arith.constant 0 : index
    %199 = arith.index_cast %198 : i32 to index
    %c9_124 = arith.constant 9 : index
    %c0_125 = arith.constant 0 : index
    %200 = vector.load %arg8[%c0_123, %199, %c9_124, %c0_125] : memref<1x18x32x128xf32, #tpu.memory_space<vmem>>, vector<1x8x16x128xf32>
    %201 = vector.shape_cast %200 : vector<1x8x16x128xf32> to vector<8x16x128xf32>
    %202 = vector.shape_cast %197 : vector<128xf32> to vector<1x1x128xf32>
    %203 = vector.broadcast %202 : vector<1x1x128xf32> to vector<8x16x128xf32>
    %204 = arith.mulf %201, %203 : vector<8x16x128xf32>
    %205 = arith.addf %195, %204 : vector<8x16x128xf32>
    %c5_126 = arith.constant 5 : index
    %c0_127 = arith.constant 0 : index
    %206 = vector.load %arg3[%c5_126, %c0_127] : memref<9x128xf32, #tpu.memory_space<vmem>>, vector<1x128xf32>
    %207 = vector.shape_cast %206 : vector<1x128xf32> to vector<128xf32>
    %c1_i32_128 = arith.constant 1 : i32
    %208 = arith.addi %133, %c1_i32_128 : i32
    %c0_129 = arith.constant 0 : index
    %209 = arith.index_cast %208 : i32 to index
    %c9_130 = arith.constant 9 : index
    %c0_131 = arith.constant 0 : index
    %210 = vector.load %arg8[%c0_129, %209, %c9_130, %c0_131] : memref<1x18x32x128xf32, #tpu.memory_space<vmem>>, vector<1x8x16x128xf32>
    %211 = vector.shape_cast %210 : vector<1x8x16x128xf32> to vector<8x16x128xf32>
    %212 = vector.shape_cast %207 : vector<128xf32> to vector<1x1x128xf32>
    %213 = vector.broadcast %212 : vector<1x1x128xf32> to vector<8x16x128xf32>
    %214 = arith.mulf %211, %213 : vector<8x16x128xf32>
    %215 = arith.addf %205, %214 : vector<8x16x128xf32>
    %c8_132 = arith.constant 8 : index
    %c0_133 = arith.constant 0 : index
    %216 = vector.load %arg3[%c8_132, %c0_133] : memref<9x128xf32, #tpu.memory_space<vmem>>, vector<1x128xf32>
    %217 = vector.shape_cast %216 : vector<1x128xf32> to vector<128xf32>
    %c2_i32_134 = arith.constant 2 : i32
    %218 = arith.addi %133, %c2_i32_134 : i32
    %c0_135 = arith.constant 0 : index
    %219 = arith.index_cast %218 : i32 to index
    %c9_136 = arith.constant 9 : index
    %c0_137 = arith.constant 0 : index
    %220 = vector.load %arg8[%c0_135, %219, %c9_136, %c0_137] : memref<1x18x32x128xf32, #tpu.memory_space<vmem>>, vector<1x8x16x128xf32>
    %221 = vector.shape_cast %220 : vector<1x8x16x128xf32> to vector<8x16x128xf32>
    %222 = vector.shape_cast %217 : vector<128xf32> to vector<1x1x128xf32>
    %223 = vector.broadcast %222 : vector<1x1x128xf32> to vector<8x16x128xf32>
    %224 = arith.mulf %221, %223 : vector<8x16x128xf32>
    %225 = arith.addf %215, %224 : vector<8x16x128xf32>
    %cst_138 = arith.constant 5.000000e-01 : f32
    %226 = vector.broadcast %cst_138 : f32 to vector<8x16x128xf32>
    %227 = arith.mulf %226, %225 : vector<8x16x128xf32>
    %cst_139 = arith.constant 0.707106769 : f32
    %228 = vector.broadcast %cst_139 : f32 to vector<8x16x128xf32>
    %229 = arith.mulf %225, %228 : vector<8x16x128xf32>
    %230 = math.erf %229 : vector<8x16x128xf32>
    %cst_140 = arith.constant 1.000000e+00 : f32
    %231 = vector.broadcast %cst_140 : f32 to vector<8x16x128xf32>
    %232 = arith.addf %231, %230 : vector<8x16x128xf32>
    %233 = arith.mulf %227, %232 : vector<8x16x128xf32>
    %c0_141 = arith.constant 0 : index
    %234 = arith.index_cast %133 : i32 to index
    %c0_142 = arith.constant 0 : index
    %c0_143 = arith.constant 0 : index
    %235 = vector.load %arg2[%c0_141, %234, %c0_142, %c0_143] : memref<1x16x16x128xf32, #tpu.memory_space<vmem>>, vector<1x8x16x128xf32>
    %236 = vector.shape_cast %235 : vector<1x8x16x128xf32> to vector<8x16x128xf32>
    %237 = vector.shape_cast %13 : vector<128xf32> to vector<1x1x128xf32>
    %238 = vector.broadcast %237 : vector<1x1x128xf32> to vector<8x16x128xf32>
    %239 = arith.mulf %233, %238 : vector<8x16x128xf32>
    %240 = vector.shape_cast %15 : vector<128xf32> to vector<1x1x128xf32>
    %241 = vector.broadcast %240 : vector<1x1x128xf32> to vector<8x16x128xf32>
    %242 = arith.addf %239, %241 : vector<8x16x128xf32>
    %243 = arith.addf %242, %236 : vector<8x16x128xf32>
    %c0_144 = arith.constant 0 : index
    %244 = arith.index_cast %133 : i32 to index
    %c0_145 = arith.constant 0 : index
    %c0_146 = arith.constant 0 : index
    %245 = vector.load %arg7[%c0_144, %244, %c0_145, %c0_146] : memref<1x16x16x128xf32, #tpu.memory_space<vmem>>, vector<1x8x16x128xf32>
    %246 = vector.shape_cast %245 : vector<1x8x16x128xf32> to vector<8x16x128xf32>
    %247 = vector.shape_cast %243 : vector<8x16x128xf32> to vector<1x8x16x128xf32>
    tpu.vector_store %arg7[%c0_144, %244, %c0_145, %c0_146], %247 {strides = array<i32>} : memref<1x16x16x128xf32, #tpu.memory_space<vmem>>, vector<1x8x16x128xf32>,
    %c2_i32_147 = arith.constant 2 : i32
    return
  }
  func.func @transform_0(%arg0: i32, %arg1: i32) -> (i32, i32, i32, i32) {
    %c0_i32 = arith.constant 0 : i32
    %c0_i32_0 = arith.constant 0 : i32
    %c0_i32_1 = arith.constant 0 : i32
    return %arg1, %c0_i32, %c0_i32_0, %arg0 : i32, i32, i32, i32
  }
  func.func @transform_1(%arg0: i32, %arg1: i32) -> (i32, i32) {
    %c0_i32 = arith.constant 0 : i32
    %c0_i32_0 = arith.constant 0 : i32
    return %c0_i32, %arg0 : i32, i32
  }
  func.func @transform_2(%arg0: i32, %arg1: i32) -> (i32, i32) {
    %c0_i32 = arith.constant 0 : i32
    %c0_i32_0 = arith.constant 0 : i32
    return %c0_i32, %arg0 : i32, i32
  }
  func.func @transform_3(%arg0: i32, %arg1: i32) -> (i32, i32) {
    %c0_i32 = arith.constant 0 : i32
    %c0_i32_0 = arith.constant 0 : i32
    return %c0_i32, %arg0 : i32, i32
  }
  func.func @transform_4(%arg0: i32, %arg1: i32) -> (i32, i32) {
    %c0_i32 = arith.constant 0 : i32
    %c0_i32_0 = arith.constant 0 : i32
    return %c0_i32, %arg0 : i32, i32
  }
  func.func @transform_5(%arg0: i32, %arg1: i32) -> (i32, i32, i32, i32) {
    %c0_i32 = arith.constant 0 : i32
    %c0_i32_0 = arith.constant 0 : i32
    %c0_i32_1 = arith.constant 0 : i32
    return %arg1, %c0_i32, %c0_i32_0, %arg0 : i32, i32, i32, i32
  }
}

</mosaic_0001>

<bundles_post_ra>
// kernel: tpu_custom_call.1
= control target key start
LH: loop header
LB: loop body
LE: loop exit
PB: predicated region body
PF: predicated region fallthrough
CT: control target
= control target key end

     0   :  { %10 = vsyncpa [#allocation4], 0  ;;  %s3542_s0 = inlined_call_operand.hbm [shape: f32[2,16,16,128], index: 0, kind: input, shape index: {}]   ;;  %s3543_s1 = inlined_call_operand.hbm [shape: f32[9,128], index: 1, kind: input, shape index: {}]   ;;  %s3544_s2 = inlined_call_operand.vmem [shape: f32[1,128], index: 2, kind: input, shape index: {}]   ;;  %s3545_s3 = inlined_call_operand.vmem [shape: f32[1,128], index: 3, kind: input, shape index: {}]   ;;  %s3546_s4 = inlined_call_operand.vmem [shape: f32[1,128], index: 4, kind: input, shape index: {}]   ;;  %s3547_s5 = inlined_call_operand.hbm [shape: f32[2,16,16,128], index: 5, kind: output, shape index: {}]  }
   0x1   :  { %12 = vsyncpa [#allocation4 + $0x1], 0 }
   0x2   :  { %13 = vsyncpa [#allocation7], 0 }
   0x3   :  { %14 = vsyncpa [#allocation5], 0 }
   0x4   :  { %16 = vsyncpa [#allocation5 + $0x1], 0  ;;  %s2314_s18 = smov 0   ;;  %s2316_s19 = smov 0  }
   0x5   :  { %s2318_s20 = smov 0   ;;  %s2320_s21 = smov 0  }
   0x6   :  { %s2322_s22 = smov 0   ;;  %s2324_s23 = smov 0  }
   0x7 LB: > { %s1906_s24 = sadd.s32 4294967295, %s2274_s23   ;;  %s1907_s25 = sadd.s32 4294967294, %s2274_s23   ;;  %s2274_s23 = sphi %s2324_s23, %s22_s23   ;;  %s2270_s22 = sphi %s2322_s22, %s3576_s22   ;;  %s2266_s21 = sphi %s2320_s21, %s3575_s21   ;;  %s2262_s20 = sphi %s2318_s20, %s3574_s20   ;;  %s2258_s19 = sphi %s2316_s19, %s3573_s19   ;;  %s2254_s18 = sphi %s2314_s18, %s3572_s18  }
   0x8   : > { %p56_p0 = scmp.ne.s32.totalorder %s2258_s19, %s2254_s18  ;;  %p2348_p1 = scmp.eq.s32.totalorder %s1906_s24, 0 }
   0x9   : > { %p2352_p2 = scmp.eq.s32.totalorder %s1906_s24, 1  ;;  %p192_p3 = scmp.eq.s32.totalorder %s1907_s25, 1 }
   0xa   : > { %s3554_s26 = scalar_select %p2348_p1, 1, 0 }
   0xb   : > { %s3555_s27 = scalar_select %p2352_p2, 1, 0 }
   0xc   : > { %p2358_p4 = por %p2348_p1, %p56_p0  ;;  %p1908_p5 = scmp.ge.s32.totalorder %s2274_s23, 1 }
   0xd   : > { %p2363_p6 = por %p192_p3, %p56_p0  ;;  %p199_p7 = scmp.lt.s32.totalorder %s2274_s23, 3 }
   0xe   : > { %s3556_s28 = scalar_select %p2358_p4, 1, 0 }
   0xf   : > { %s3557_s29 = scalar_select %p2363_p6, 1, 0 }
  0x10   : > { %p2368_p8 = pnand %p1908_p5, %p199_p7  ;;  %s2276_s6 = smov [#allocation6]  }
  0x11   : > { %s213_s7 = sshll.u32 %s2276_s6, 4  ;;  %s31_s9 = sadd.s32 1, %s2270_s22  ;;  %s214_s7 = int_to_ptr.vmem [resolvable:$true] %s213_s7 }
  0x12   : > { %s3558_s30 = scalar_select %p2368_p8, 1, 0 }
  0x13   : > { %p1989_p9 = pneg %p2368_p8  ;;  %s2130_s12 = scalar_lea.hbm %s3543_s1, 256 }
  0x14   : > { %p2131_p12 = scmp.ne.s32.totalorder %s3543_s1, %s2130_s12  ;;  %p2137_p5 = scmp.lt.u32.totalorder %s2130_s12, %s3543_s1 }
  0x15   : > { %p2377_p11 = pnand %p1989_p9, %p2348_p1 }
  0x17   : > { %p2132_p13 = pneg %p2377_p11 }
  0x19   : > { %p2133_p0 = pnand %p2132_p13, %p2131_p12 }
  0x1b   : > { %p2134_p3 = pneg %p2133_p0 }
  0x1d   : > { %p2139_p7 = pnand %p2137_p5, %p2134_p3 }
  0x1f   : > { %2142 = shalt.err (!%p2139_p7)
}
  0x20   : > { %s2143_s17 = scalar_lea.vmem %s214_s7, 256  ;;  %p2151_p1 = scmp.lt.s32.totalorder %s214_s7, %s214_s7 }
  0x21   : > { %p2144_p9 = scmp.ne.s32.totalorder %s214_s7, %s2143_s17  ;;  %p2152_p4 = scmp.lt.s32.totalorder %s2143_s17, %s2143_s17 }
  0x23   : > { %p2146_p10 = pnand %p2144_p9, %p2132_p13  ;;  %p2153_p8 = por %p2152_p4, %p2151_p1 }
  0x25   : > { %p2147_p6 = pneg %p2146_p10 }
  0x27   : > { %p2154_p2 = pnand %p2153_p8, %p2147_p6 }
  0x29   : > { %2157 = shalt.err (!%p2154_p2)
}
  0x2a   : > { %s3552_s24 = smov 128   ;;  %s2278_s25 = smov 8  }
  0x2b   : > { %1992 = dma.hbm_to_vmem [thread:$0]  (!%p2377_p11), %s3543_s1, 256, %s214_s7, [#allocation7], %s3552_s24, %s3552_s24, %s2278_s25  }
  0x2c   : > { %p32_p1 = scmp.ge.s32.totalorder %s31_s9, 2  ;;  %s43_s11 = sadd.s32 1, %s2262_s20 }
  0x2d   : > { %p50_p2 = scmp.ne.s32.totalorder %s2262_s20, %s2258_s19  ;;  %p51_p4 = scmp.eq.s32.totalorder %s2274_s23, 0 }
  0x2e   : > { %s3578_s9 = smov (%p32_p1, %s31_s9), 0  ;;  %p3561_p8 = scmp.ne.s32.totalorder %s3555_s27, 0 }
  0x2f   : > { %p2407_p6 = por %p51_p4, %p50_p2  ;;  %s38_s13 = ssub.s32 %s2270_s22, %s3578_s9 }
  0x30   : > { %p2413_p10 = por %p3561_p8, %p50_p2  ;;  %p2002_p12 = scmp.lt.s32.totalorder %s2274_s23, 2 }
  0x31   : > { %p41_p11 = scmp.eq.s32.totalorder %s38_s13, 0  ;;  %s245_s7 = sand.u32 1, %s2262_s20  }
  0x32   : > { %s1914_s14 = sshll.u32 %s245_s7, 8  ;;  %s1979_s16 = sshll.u32 %s2270_s22, 12 }
  0x33   : > { %s2422_s15 = scalar_select %p41_p11, %s2262_s20, %s43_s11  }
  0x34   : > { %s2428_s10 = scalar_lea.hbm %s3542_s0, %s1979_s16  ;;  %s249_s27 = scalar_lea.vmem [#allocation3], %s1914_s14 }
  0x35   : > { %s257_s24 = sshll.u32 %s249_s27, 4  ;;  %p2434_p13 = pnand %p2002_p12, %p2407_p6  ;;  %s2430_s24 = int_to_ptr.vmem [resolvable:$true] %s257_s24 }
  0x36   : > { %s2438_s11 = scalar_lea.sflag [#allocation4], %s245_s7  ;;  %s2158_s17 = scalar_lea.hbm %s2428_s10, 4096 }
  0x37   : > { %p2159_p0 = scmp.ne.s32.totalorder %s2428_s10, %s2158_s17  ;;  %p2160_p3 = pneg %p2434_p13 }
  0x38   : > { %s2163_s12 = scalar_lea.hbm %s3542_s0, 8192  ;;  %p2164_p9 = scmp.lt.u32.totalorder %s2428_s10, %s3542_s0 }
  0x39   : > { %p2161_p5 = pnand %p2160_p3, %p2159_p0  ;;  %p2165_p1 = scmp.lt.u32.totalorder %s2163_s12, %s2158_s17 }
  0x3a   : > { %p2167_p4 = scmp.lt.u32.totalorder %s2158_s17, %s2428_s10 }
  0x3b   : > { %p2162_p7 = pneg %p2161_p5  ;;  %p2166_p2 = por %p2165_p1, %p2164_p9 }
  0x3d   : > { %p2168_p6 = por %p2167_p4, %p2166_p2 }
  0x3f   : > { %p2169_p8 = pnand %p2168_p6, %p2162_p7 }
  0x41   : > { %2172 = shalt.err (!%p2169_p8)
}
  0x42   : > { %s2173_s7 = scalar_lea.vmem %s2430_s24, 4096  ;;  %s2279_s14 = smov [#allocation3]  }
  0x43   : > { %p2174_p12 = scmp.ne.s32.totalorder %s2430_s24, %s2173_s7  ;;  %s2178_s16 = sshll.u32 %s2279_s14, 4  ;;  %s2179_s16 = int_to_ptr.vmem [resolvable:$false] %s2178_s16 }
  0x44   : > { %s2180_s6 = scalar_lea.vmem %s2179_s16, 8192  ;;  %p2181_p5 = scmp.lt.s32.totalorder %s2430_s24, %s2179_s16 }
  0x45   : > { %p2176_p11 = pnand %p2174_p12, %p2160_p3  ;;  %p2182_p9 = scmp.lt.s32.totalorder %s2180_s6, %s2173_s7 }
  0x47   : > { %p2177_p0 = pneg %p2176_p11  ;;  %p2183_p1 = por %p2182_p9, %p2181_p5 }
  0x49   : > { %p2184_p2 = pnand %p2183_p1, %p2177_p0 }
  0x4b   : > { %2187 = shalt.err (!%p2184_p2)
}
  0x4c   : > { %s3564_s17 = smov 128   ;;  %p3565_p3 = scmp.ne.s32.totalorder %s3558_s30, 0 }
  0x4d   : > { %1996 = dma.hbm_to_vmem [thread:$0]  (!%p2434_p13), %s2428_s10, 4096, %s2430_s24, %s2438_s11, %s3564_s17, %s3564_s17, %s2278_s25  }
  0x4e   : > { %269 = sbr.rel (%p3565_p3) target bundleno = 366 (0x16e), region = 40 }
  0x55   : > { %s2472_s12 = sand.u32 1, %s2258_s19   ;;  %p3566_p7 = scmp.ne.s32.totalorder %s3556_s28, 0 }
  0x56   : > { %s1918_s27 = sshll.u32 %s2472_s12, 8  ;;  %s272_s7 = scalar_lea.sflag [#allocation4], %s2472_s12 }
  0x57   : > { %s2478_s13 = scalar_lea.vmem [#allocation3], %s1918_s27 }
  0x58   : > { %2241 = dma.done.wait (%p3566_p7), %s272_s7, 4096  }
  0x59   : > { %2243 = vsyncadd (%p3566_p7), %s272_s7, 4294963200  ;;  %p3567_p13 = scmp.ne.s32.totalorder %s3554_s26, 0 }
  0x5b   : > { %2245 = dma.done.wait (%p3567_p13), [#allocation7], 256  }
  0x5c   : > { %2247 = vsyncadd (%p3567_p13), [#allocation7], 4294967040  ;;  %v2280_v0 = vmov 0.0   ;;  %v2489_v1 = vld [vmem:[%s2478_s13] sm:$0xff]  ;;  %v2492_v2 = vld [vmem:[%s2478_s13 + $0x8] sm:$0xff]  ;;  %s2780_s11 = scalar_lea.vmem [#allocation8], %s1918_s27 }
  0x5d   : > { %325 = vst [vmem:[#allocation2 + $0x8] sm:$0xff] %v2280_v0  ;;  %326 = vst [vmem:[#allocation2 + $0x10] sm:$0xff] %v2280_v0  ;;  %v2495_v3 = vld [vmem:[%s2478_s13 + $0x10] sm:$0xff]  ;;  %v2501_v4 = vld [vmem:[%s2478_s13 + $0x18] sm:$0xff]  ;;  %s1980_s26 = sshll.u32 %s2266_s21, 12  ;;  %s1766_s28 = sshll.u32 %s2780_s11, 4  ;;  %s3492_s28 = int_to_ptr.vmem [resolvable:$true] %s1766_s28 }
  0x5e   : > { %330 = vst [vmem:[#allocation2 + $0x228] sm:$0xff] %v2280_v0  ;;  %331 = vst [vmem:[#allocation2 + $0x230] sm:$0xff] %v2280_v0  ;;  %v2505_v5 = vld [vmem:[%s2478_s13 + $0x20] sm:$0xff]  ;;  %v2508_v6 = vld [vmem:[%s2478_s13 + $0x28] sm:$0xff]  ;;  %s3490_s25 = scalar_lea.hbm %s3547_s5, %s1980_s26  ;;  %s1752_s10 = scalar_lea.sflag [#allocation5], %s2472_s12 }
  0x5f   : > { %333 = vst [vmem:[#allocation2] sm:$0xff] %v2280_v0  ;;  %334 = vst [vmem:[#allocation2 + $0x20] sm:$0xff] %v2280_v0  ;;  %v2511_v7 = vld [vmem:[%s2478_s13 + $0x30] sm:$0xff]  ;;  %v2517_v8 = vld [vmem:[%s2478_s13 + $0x38] sm:$0xff]  ;;  %s2188_s14 = scalar_lea.vmem %s3492_s28, 4096  ;;  %s2281_s21 = smov [#allocation8]  }
  0x60   : > { %335 = vst [vmem:[#allocation2 + $0x40] sm:$0xff] %v2280_v0  ;;  %336 = vst [vmem:[#allocation2 + $0x60] sm:$0xff] %v2280_v0  ;;  %v2520_v9 = vld [vmem:[%s2478_s13 + $0x40] sm:$0xff]  ;;  %v2523_v10 = vld [vmem:[%s2478_s13 + $0x48] sm:$0xff]  ;;  %p2189_p4 = scmp.ne.s32.totalorder %s3492_s28, %s2188_s14 }
  0x61   : > { %337 = vst [vmem:[#allocation2 + $0x80] sm:$0xff] %v2280_v0  ;;  %338 = vst [vmem:[#allocation2 + $0xa0] sm:$0xff] %v2280_v0  ;;  %v2529_v11 = vld [vmem:[%s2478_s13 + $0x50] sm:$0xff]  ;;  %v2532_v12 = vld [vmem:[%s2478_s13 + $0x58] sm:$0xff] }
  0x62   : > { %339 = vst [vmem:[#allocation2 + $0xc0] sm:$0xff] %v2280_v0  ;;  %340 = vst [vmem:[#allocation2 + $0xe0] sm:$0xff] %v2280_v0  ;;  %v2535_v13 = vld [vmem:[%s2478_s13 + $0x60] sm:$0xff]  ;;  %v2541_v14 = vld [vmem:[%s2478_s13 + $0x68] sm:$0xff]  ;;  %p2190_p6 = pnand %p2189_p4, %p2413_p10 }
  0x63   : > { %341 = vst [vmem:[#allocation2 + $0x100] sm:$0xff] %v2280_v0  ;;  %342 = vst [vmem:[#allocation2 + $0x120] sm:$0xff] %v2280_v0  ;;  %v2544_v15 = vld [vmem:[%s2478_s13 + $0x70] sm:$0xff]  ;;  %v384_v16 = vld [vmem:[%s2478_s13 + $0x78] sm:$0xff] }
  0x64   : > { %343 = vst [vmem:[#allocation2 + $0x140] sm:$0xff] %v2280_v0  ;;  %344 = vst [vmem:[#allocation2 + $0x160] sm:$0xff] %v2280_v0  ;;  %v385_v17 = vld [vmem:[%s2478_s13 + $0x80] sm:$0xff]  ;;  %v386_v18 = vld [vmem:[%s2478_s13 + $0x88] sm:$0xff]  ;;  %p2191_p8 = pneg %p2190_p6 }
  0x65   : > { %345 = vst [vmem:[#allocation2 + $0x180] sm:$0xff] %v2280_v0  ;;  %346 = vst [vmem:[#allocation2 + $0x1a0] sm:$0xff] %v2280_v0  ;;  %v387_v19 = vld [vmem:[%s2478_s13 + $0x90] sm:$0xff]  ;;  %v388_v20 = vld [vmem:[%s2478_s13 + $0x98] sm:$0xff] }
  0x66   : > { %347 = vst [vmem:[#allocation2 + $0x1c0] sm:$0xff] %v2280_v0  ;;  %348 = vst [vmem:[#allocation2 + $0x1e0] sm:$0xff] %v2280_v0  ;;  %v389_v21 = vld [vmem:[%s2478_s13 + $0xa0] sm:$0xff]  ;;  %v390_v22 = vld [vmem:[%s2478_s13 + $0xa8] sm:$0xff] }
  0x67   : > { %349 = vst [vmem:[#allocation2 + $0x200] sm:$0xff] %v2280_v0  ;;  %352 = vst [vmem:[#allocation2 + $0x38] sm:$0xff] %v2280_v0  ;;  %v391_v23 = vld [vmem:[%s2478_s13 + $0xb0] sm:$0xff]  ;;  %v392_v24 = vld [vmem:[%s2478_s13 + $0xb8] sm:$0xff] }
  0x68   : > { %353 = vst [vmem:[#allocation2 + $0x58] sm:$0xff] %v2280_v0  ;;  %354 = vst [vmem:[#allocation2 + $0x78] sm:$0xff] %v2280_v0  ;;  %v446_v25 = vld [vmem:[#allocation2 + $0x7] sm:$0xff]  ;;  %v447_v26 = vld [vmem:[#allocation2 + $0xf] sm:$0xff] }
  0x69   : > { %355 = vst [vmem:[#allocation2 + $0x98] sm:$0xff] %v2280_v0  ;;  %356 = vst [vmem:[#allocation2 + $0xb8] sm:$0xff] %v2280_v0  ;;  %v393_v27 = vld [vmem:[%s2478_s13 + $0xc0] sm:$0xff]  ;;  %v394_v28 = vld [vmem:[%s2478_s13 + $0xc8] sm:$0xff] }
  0x6a   : > { %357 = vst [vmem:[#allocation2 + $0xd8] sm:$0xff] %v2280_v0  ;;  %358 = vst [vmem:[#allocation2 + $0xf8] sm:$0xff] %v2280_v0  ;;  %v395_v29 = vld [vmem:[%s2478_s13 + $0xd0] sm:$0xff]  ;;  %v396_v32 = vld [vmem:[%s2478_s13 + $0xd8] sm:$0xff] }
  0x6b   : > { %359 = vst [vmem:[#allocation2 + $0x118] sm:$0xff] %v2280_v0  ;;  %360 = vst [vmem:[#allocation2 + $0x138] sm:$0xff] %v2280_v0  ;;  %v397_v33 = vld [vmem:[%s2478_s13 + $0xe0] sm:$0xff]  ;;  %v398_v34 = vld [vmem:[%s2478_s13 + $0xe8] sm:$0xff] }
  0x6c   : > { %361 = vst [vmem:[#allocation2 + $0x158] sm:$0xff] %v2280_v0  ;;  %362 = vst [vmem:[#allocation2 + $0x178] sm:$0xff] %v2280_v0  ;;  %v399_v35 = vld [vmem:[%s2478_s13 + $0xf0] sm:$0xff]  ;;  %v400_v37 = vld [vmem:[%s2478_s13 + $0xf8] sm:$0xff] }
  0x6d   : > { %363 = vst [vmem:[#allocation2 + $0x198] sm:$0xff] %v2280_v0  ;;  %364 = vst [vmem:[#allocation2 + $0x1b8] sm:$0xff] %v2280_v0  ;;  %v2572_v38 = vld [vmem:[%s3544_s2] ss:$0 sm:$0xff]  ;;  %v2576_v40 = vld [vmem:[#allocation6 + $0x3] ss:$0 sm:$0xff] }
  0x6e   : > { %365 = vst [vmem:[#allocation2 + $0x1d8] sm:$0xff] %v2280_v0  ;;  %366 = vst [vmem:[#allocation2 + $0x1f8] sm:$0xff] %v2280_v0  ;;  %v2574_v39 = vld [vmem:[#allocation6] ss:$0 sm:$0xff]  ;;  %v2582_v44 = vld [vmem:[#allocation6 + $0x6] ss:$0 sm:$0xff] }
  0x6f   : > { %367 = vst [vmem:[#allocation2 + $0x218] sm:$0xff] %v2280_v0  ;;  %350 = vst [vmem:[#allocation2 + $0x220] sm:$0xff] %v2280_v0  ;;  %v466_v42 = vmul.f32 %v2574_v39, %v446_v25  ;;  %v467_v45 = vmul.f32 %v2574_v39, %v447_v26  ;;  %v2587_v47 = vld [vmem:[#allocation6 + $0x1] ss:$0 sm:$0xff]  ;;  %v2589_v48 = vld [vmem:[#allocation6 + $0x2] ss:$0 sm:$0xff] }
  0x70   : > { %351 = vst [vmem:[#allocation2 + $0x18] sm:$0xff] %v2280_v0  ;;  %368 = vst [vmem:[#allocation2 + $0x238] sm:$0xff] %v2280_v0  ;;  %v770_v49 = vld [vmem:[#allocation2 + $0x9] sm:$0xff]  ;;  %v2594_v52 = vld [vmem:[#allocation6 + $0x4] ss:$0 sm:$0xff]  ;;  %v631_v57 = vmul.f32 0.0, %v2587_v47 }
  0x71   : > { %402 = vst [vmem:[#allocation2 + $0x28] sm:$0xff] %v2489_v1  ;;  %403 = vst [vmem:[#allocation2 + $0x30] sm:$0xff] %v2492_v2  ;;  %v482_v50 = vadd.f32 %v2572_v38, %v466_v42  ;;  %v2596_v53 = vld [vmem:[#allocation6 + $0x5] ss:$0 sm:$0xff]  ;;  %v483_v55 = vadd.f32 %v2572_v38, %v467_v45  ;;  %v684_v58 = vmul.f32 %v2594_v52, %v2489_v1  ;;  %v2604_v59 = vld [vmem:[#allocation6 + $0x7] ss:$0 sm:$0xff] }
  0x72   : > { %404 = vst [vmem:[#allocation2 + $0x48] sm:$0xff] %v2495_v3  ;;  %405 = vst [vmem:[#allocation2 + $0x50] sm:$0xff] %v2501_v4  ;;  %v737_v63 = vmul.f32 %v2604_v59, %v2495_v3  ;;  %v790_v0 = vmul.f32 %v2589_v48, %v770_v49 }
  0x73   : > { %406 = vst [vmem:[#allocation2 + $0x68] sm:$0xff] %v2505_v5  ;;  %407 = vst [vmem:[#allocation2 + $0x70] sm:$0xff] %v2508_v6 }
  0x74   : > { %408 = vst [vmem:[#allocation2 + $0x88] sm:$0xff] %v2511_v7  ;;  %409 = vst [vmem:[#allocation2 + $0x90] sm:$0xff] %v2517_v8 }
  0x75   : > { %410 = vst [vmem:[#allocation2 + $0xa8] sm:$0xff] %v2520_v9  ;;  %411 = vst [vmem:[#allocation2 + $0xb0] sm:$0xff] %v2523_v10 }
  0x76   : > { %412 = vst [vmem:[#allocation2 + $0xc8] sm:$0xff] %v2529_v11  ;;  %413 = vst [vmem:[#allocation2 + $0xd0] sm:$0xff] %v2532_v12 }
  0x77   : > { %414 = vst [vmem:[#allocation2 + $0xe8] sm:$0xff] %v2535_v13  ;;  %3568 = vst [vmem:[#allocation12_spill] sm:$0xff] %v2544_v15 }
  0x78   : > { %415 = vst [vmem:[#allocation2 + $0xf0] sm:$0xff] %v2541_v14  ;;  %416 = vst [vmem:[#allocation2 + $0x108] sm:$0xff] %v2544_v15  ;;  %v448_v30 = vld [vmem:[#allocation2 + $0x27] sm:$0xff]  ;;  %v2560_v31 = vld [vmem:[#allocation2 + $0x2f] sm:$0xff] }
  0x79   : > { %417 = vst [vmem:[#allocation2 + $0x110] sm:$0xff] %v384_v16  ;;  %418 = vst [vmem:[#allocation2 + $0x128] sm:$0xff] %v385_v17  ;;  %v2566_v36 = vld [vmem:[#allocation2 + $0x47] sm:$0xff]  ;;  %v2578_v41 = vld [vmem:[#allocation2 + $0x4f] sm:$0xff]  ;;  %v522_v43 = vmul.f32 %v2576_v40, %v448_v30  ;;  %v523_v46 = vmul.f32 %v2576_v40, %v2560_v31  ;;  %v468_v61 = vmul.f32 %v2574_v39, %v448_v30 }
  0x7a   : > { %419 = vst [vmem:[#allocation2 + $0x130] sm:$0xff] %v386_v18  ;;  %420 = vst [vmem:[#allocation2 + $0x148] sm:$0xff] %v387_v19  ;;  %v578_v51 = vmul.f32 %v2582_v44, %v2566_v36  ;;  %v823_v54 = vld [vmem:[#allocation2 + $0x29] sm:$0xff]  ;;  %v579_v60 = vmul.f32 %v2582_v44, %v2578_v41  ;;  %v2612_v16 = vld [vmem:[#allocation6 + $0x8] ss:$0 sm:$0xff] }
  0x7b   : > { %421 = vst [vmem:[#allocation2 + $0x150] sm:$0xff] %v388_v20  ;;  %422 = vst [vmem:[#allocation2 + $0x168] sm:$0xff] %v389_v21  ;;  %v2599_v56 = vld [vmem:[#allocation2 + $0x67] sm:$0xff]  ;;  %v538_v62 = vadd.f32 %v522_v43, %v482_v50  ;;  %v539_v18 = vadd.f32 %v523_v46, %v483_v55  ;;  %v771_v19 = vld [vmem:[#allocation2 + $0x11] sm:$0xff]  ;;  %v843_v20 = vmul.f32 %v2596_v53, %v823_v54 }
  0x7c   : > { %423 = vst [vmem:[#allocation2 + $0x170] sm:$0xff] %v390_v22  ;;  %424 = vst [vmem:[#allocation2 + $0x188] sm:$0xff] %v391_v23  ;;  %v2614_v17 = vld [vmem:[#allocation2 + $0x49] sm:$0xff]  ;;  %v685_v21 = vmul.f32 %v2594_v52, %v2492_v2  ;;  %v824_v22 = vld [vmem:[#allocation2 + $0x31] sm:$0xff]  ;;  %v484_v23 = vadd.f32 %v2572_v38, %v468_v61  ;;  %v686_v43 = vmul.f32 %v2594_v52, %v2495_v3 }
  0x7d   : > { %425 = vst [vmem:[#allocation2 + $0x190] sm:$0xff] %v392_v24  ;;  %426 = vst [vmem:[#allocation2 + $0x1a8] sm:$0xff] %v393_v27  ;;  %v524_v24 = vmul.f32 %v2576_v40, %v2566_v36  ;;  %v594_v25 = vadd.f32 %v578_v51, %v538_v62  ;;  %v595_v26 = vadd.f32 %v579_v60, %v539_v18  ;;  %v2636_v45 = vld [vmem:[#allocation2 + $0x69] sm:$0xff] }
  0x7e   : > { %427 = vst [vmem:[#allocation2 + $0x1b0] sm:$0xff] %v394_v28  ;;  %428 = vst [vmem:[#allocation2 + $0x1c8] sm:$0xff] %v395_v29  ;;  %v738_v27 = vmul.f32 %v2604_v59, %v2501_v4  ;;  %v2624_v28 = vld [vmem:[#allocation2 + $0x51] sm:$0xff]  ;;  %v580_v29 = vmul.f32 %v2582_v44, %v2599_v56  ;;  %v896_v30 = vmul.f32 %v2612_v16, %v2614_v17  ;;  %v2758_v15 = vld [vmem:[#allocation2 + $0xa9] sm:$0xff] }
  0x7f   : > { %429 = vst [vmem:[#allocation2 + $0x1d0] sm:$0xff] %v396_v32  ;;  %430 = vst [vmem:[#allocation2 + $0x1e8] sm:$0xff] %v397_v33  ;;  %v791_v32 = vmul.f32 %v2589_v48, %v771_v19  ;;  %v540_v33 = vadd.f32 %v524_v24, %v484_v23  ;;  %v844_v42 = vmul.f32 %v2596_v53, %v824_v22  ;;  %v2638_v46 = vld [vmem:[#allocation2 + $0x6f] sm:$0xff] }
  0x80   : > { %431 = vst [vmem:[#allocation2 + $0x1f0] sm:$0xff] %v398_v34  ;;  %432 = vst [vmem:[#allocation2 + $0x208] sm:$0xff] %v399_v35  ;;  %v633_v34 = vmul.f32 %v2587_v47, %v2489_v1  ;;  %v647_v35 = vadd.f32 %v631_v57, %v594_v25  ;;  %v897_v49 = vmul.f32 %v2612_v16, %v2624_v28 }
  0x81   : > { %433 = vst [vmem:[#allocation2 + $0x210] sm:$0xff] %v400_v37  ;;  %v648_v37 = vadd.f32 %v631_v57, %v595_v26  ;;  %v596_v50 = vadd.f32 %v580_v29, %v540_v33  ;;  %v739_v51 = vmul.f32 %v2604_v59, %v2505_v5  ;;  %v469_v55 = vmul.f32 %v2574_v39, %v2560_v31 }
  0x82   : > { %v700_v57 = vadd.f32 %v684_v58, %v647_v35  ;;  %v792_v61 = vmul.f32 %v2589_v48, %v823_v54  ;;  %v845_v62 = vmul.f32 %v2596_v53, %v2614_v17  ;;  %v898_v19 = vmul.f32 %v2612_v16, %v2636_v45  ;;  %v2658_v58 = vld [vmem:[#allocation2 + $0x87] sm:$0xff] }
  0x83   : > { %v701_v60 = vadd.f32 %v685_v21, %v648_v37  ;;  %v649_v18 = vadd.f32 %v633_v34, %v596_v50  ;;  %v485_v23 = vadd.f32 %v2572_v38, %v469_v55  ;;  %v525_v24 = vmul.f32 %v2576_v40, %v2578_v41 }
  0x84   : > { %v753_v25 = vadd.f32 %v737_v63, %v700_v57  ;;  %v581_v31 = vmul.f32 %v2582_v44, %v2638_v46  ;;  %v634_v54 = vmul.f32 %v2587_v47, %v2492_v2  ;;  %v687_v33 = vmul.f32 %v2594_v52, %v2501_v4  ;;  %v2667_v57 = vld [vmem:[#allocation2 + $0x71] sm:$0xff] }
  0x85   : > { %v754_v26 = vadd.f32 %v738_v27, %v701_v60  ;;  %v702_v21 = vadd.f32 %v686_v43, %v649_v18  ;;  %v541_v29 = vadd.f32 %v525_v24, %v485_v23  ;;  %v470_v34 = vmul.f32 %v2574_v39, %v2566_v36 }
  0x86   : > { %v806_v35 = vadd.f32 %v790_v0, %v753_v25  ;;  %v740_v63 = vmul.f32 %v2604_v59, %v2508_v6  ;;  %v793_v27 = vmul.f32 %v2589_v48, %v824_v22  ;;  %v526_v60 = vmul.f32 %v2576_v40, %v2599_v56 }
  0x87   : > { %v807_v37 = vadd.f32 %v791_v32, %v754_v26  ;;  %v755_v50 = vadd.f32 %v739_v51, %v702_v21  ;;  %v597_v55 = vadd.f32 %v581_v31, %v541_v29  ;;  %v486_v43 = vadd.f32 %v2572_v38, %v470_v34 }
  0x88   : > { %v859_v18 = vadd.f32 %v843_v20, %v806_v35  ;;  %v846_v36 = vmul.f32 %v2596_v53, %v2624_v28  ;;  %v582_v0 = vmul.f32 %v2582_v44, %v2658_v58  ;;  %v635_v51 = vmul.f32 %v2587_v47, %v2495_v3 }
  0x89   : > { %v860_v23 = vadd.f32 %v844_v42, %v807_v37  ;;  %v808_v32 = vadd.f32 %v792_v61, %v755_v50  ;;  %v650_v24 = vadd.f32 %v634_v54, %v597_v55  ;;  %v542_v22 = vadd.f32 %v526_v60, %v486_v43  ;;  %v2684_v61 = vld [vmem:[#allocation2 + $0x89] sm:$0xff] }
  0x8a   : > { %v912_v25 = vadd.f32 %v896_v30, %v859_v18  ;;  %v899_v31 = vmul.f32 %v2612_v16, %v2667_v57  ;;  %v471_v20 = vmul.f32 %v2574_v39, %v2578_v41  ;;  %v688_v34 = vmul.f32 %v2594_v52, %v2505_v5  ;;  %v2690_v37 = vld [vmem:[#allocation2 + $0x8f] sm:$0xff] }
  0x8b   : > { %v913_v26 = vadd.f32 %v897_v49, %v860_v23  ;;  %v861_v42 = vadd.f32 %v845_v62, %v808_v32  ;;  %v703_v21 = vadd.f32 %v687_v33, %v650_v24  ;;  %v598_v29 = vadd.f32 %v582_v0, %v542_v22 }
  0x8c   : > { %v944_v54 = vmul.f32 0.70710677, %v912_v25  ;;  %v741_v30 = vmul.f32 %v2604_v59, %v2511_v7  ;;  %v794_v49 = vmul.f32 %v2589_v48, %v2614_v17  ;;  %v487_v33 = vadd.f32 %v2572_v38, %v471_v20  ;;  %v2705_v20 = vld [vmem:[#allocation2 + $0xa7] sm:$0xff] }
  0x8d   : > { %v945_v35 = vmul.f32 0.70710677, %v913_v26  ;;  %v914_v50 = vadd.f32 %v898_v19, %v861_v42  ;;  %v756_v41 = vadd.f32 %v740_v63, %v703_v21  ;;  %v651_v62 = vadd.f32 %v635_v51, %v598_v29 }
  0x8e   : > { %2059 = verf.f32 %v944_v54  ;;  %v847_v55 = vmul.f32 %v2596_v53, %v2636_v45  ;;  %v900_v43 = vmul.f32 %v2612_v16, %v2684_v61  ;;  %v527_v60 = vmul.f32 %v2576_v40, %v2638_v46 }
  0x8f   : > { %v928_v18 = vmul.f32 0.5, %v912_v25  ;;  %2061 = verf.f32 %v945_v35  ;;  %v946_v17 = vmul.f32 0.70710677, %v914_v50  ;;  %v809_v23 = vadd.f32 %v793_v27, %v756_v41  ;;  %v2707_v27 = vld [vmem:[#allocation2 + $0x91] sm:$0xff] }
  0x90   : > { %v704_v0 = vadd.f32 %v688_v34, %v651_v62  ;;  %v543_v19 = vadd.f32 %v527_v60, %v487_v33  ;;  %v583_v63 = vmul.f32 %v2582_v44, %v2690_v37  ;;  %v636_v32 = vmul.f32 %v2587_v47, %v2501_v4 }
  0x91   : > { %v929_v24 = vmul.f32 0.5, %v913_v26  ;;  %2063 = verf.f32 %v946_v17  ;;  %v862_v22 = vadd.f32 %v846_v36, %v809_v23  ;;  %v689_v51 = vmul.f32 %v2594_v52, %v2508_v6  ;;  %v2728_v23 = vld [vmem:[#allocation2 + $0xaf] sm:$0xff] }
  0x92   : > { %v930_v25 = vmul.f32 0.5, %v914_v50  ;;  %v757_v42 = vadd.f32 %v741_v30, %v704_v0  ;;  %v599_v21 = vadd.f32 %v583_v63, %v543_v19  ;;  %v472_v29 = vmul.f32 %v2574_v39, %v2599_v56 }
  0x93   : > { %v915_v34 = vadd.f32 %v899_v31, %v862_v22  ;;  %v742_v54 = vmul.f32 %v2604_v59, %v2517_v8  ;;  %v795_v36 = vmul.f32 %v2589_v48, %v2624_v28  ;;  %v848_v26 = vmul.f32 %v2596_v53, %v2667_v57 }
  0x94   : > { %v810_v35 = vadd.f32 %v794_v49, %v757_v42  ;;  %v652_v41 = vadd.f32 %v636_v32, %v599_v21  ;;  %v488_v30 = vadd.f32 %v2572_v38, %v472_v29  ;;  %v528_v50 = vmul.f32 %v2576_v40, %v2658_v58 }
  0x95   : > { %v947_v62 = vmul.f32 0.70710677, %v915_v34  ;;  %v901_v56 = vmul.f32 %v2612_v16, %v2707_v27  ;;  %v584_v31 = vmul.f32 %v2582_v44, %v2705_v20  ;;  %v637_v28 = vmul.f32 %v2587_v47, %v2505_v5 }
  0x96   : > { %v863_v33 = vadd.f32 %v847_v55, %v810_v35  ;;  %v705_v60 = vadd.f32 %v689_v51, %v652_v41  ;;  %v544_v17 = vadd.f32 %v528_v50, %v488_v30  ;;  %v690_v49 = vmul.f32 %v2594_v52, %v2511_v7 }
  0x97   : > { %v2730_v0 = vmul.f32 0.5, %v915_v34  ;;  %2065 = verf.f32 %v947_v62  ;;  %v743_v19 = vmul.f32 %v2604_v59, %v2520_v9  ;;  %v473_v63 = vmul.f32 %v2574_v39, %v2638_v46  ;;  %v2746_v46 = vld [vmem:[%s3545_s3] ss:$0 sm:$0xff] }
  0x98   : > { %v2060_v32 = vpop.eup %2059  ;;  %v916_v22 = vadd.f32 %v900_v43, %v863_v33  ;;  %v758_v42 = vadd.f32 %v742_v54, %v705_v60  ;;  %v600_v55 = vadd.f32 %v584_v31, %v544_v17  ;;  %v796_v51 = vmul.f32 %v2589_v48, %v2636_v45  ;;  %v2755_v17 = vld [vmem:[%s3546_s4] ss:$0 sm:$0xff] }
  0x99   : > { %v2062_v21 = vpop.eup %2061  ;;  %v976_v29 = vadd.f32 1.0, %v2060_v32  ;;  %v849_v34 = vmul.f32 %v2596_v53, %v2684_v61  ;;  %v489_v35 = vadd.f32 %v2572_v38, %v473_v63  ;;  %v529_v41 = vmul.f32 %v2576_v40, %v2690_v37 }
  0x9a   : > { %v977_v43 = vadd.f32 1.0, %v2062_v21  ;;  %v948_v54 = vmul.f32 0.70710677, %v916_v22  ;;  %v811_v30 = vadd.f32 %v795_v36, %v758_v42  ;;  %v585_v45 = vmul.f32 %v2582_v44, %v2728_v23 }
  0x9b   : > { %v2064_v50 = vpop.eup %2063  ;;  %v992_v62 = vmul.f32 %v976_v29, %v928_v18  ;;  %v653_v31 = vadd.f32 %v637_v28, %v600_v55  ;;  %v545_v33 = vadd.f32 %v529_v41, %v489_v35  ;;  %v638_v60 = vmul.f32 %v2587_v47, %v2508_v6 }
  0x9c   : > { %v993_v63 = vmul.f32 %v977_v43, %v929_v24  ;;  %v978_v32 = vadd.f32 1.0, %v2064_v50  ;;  %2067 = verf.f32 %v948_v54  ;;  %v864_v21 = vadd.f32 %v848_v26, %v811_v30 }
  0x9d   : > { %v1032_v36 = vmul.f32 %v2746_v46, %v992_v62  ;;  %v706_v42 = vadd.f32 %v690_v49, %v653_v31  ;;  %v601_v18 = vadd.f32 %v585_v45, %v545_v33  ;;  %v691_v28 = vmul.f32 %v2594_v52, %v2517_v8 }
  0x9e   : > { %v1033_v55 = vmul.f32 %v2746_v46, %v993_v63  ;;  %v994_v29 = vmul.f32 %v978_v32, %v930_v25  ;;  %v917_v35 = vadd.f32 %v901_v56, %v864_v21  ;;  %v744_v41 = vmul.f32 %v2604_v59, %v2523_v10  ;;  %v2776_v63 = vld [vmem:[#allocation2 + $0xc7] sm:$0xff]  ;;  %v2785_v21 = vld [vmem:[#allocation2 + $0xb1] sm:$0xff] }
  0x9f   : > { %v1054_v24 = vadd.f32 %v2755_v17, %v1032_v36  ;;  %v759_v43 = vadd.f32 %v743_v19, %v706_v42  ;;  %v654_v26 = vadd.f32 %v638_v60, %v601_v18  ;;  %v474_v49 = vmul.f32 %v2574_v39, %v2658_v58 }
  0xa0   : > { %v1055_v54 = vadd.f32 %v2755_v17, %v1033_v55  ;;  %v1034_v30 = vmul.f32 %v2746_v46, %v994_v29  ;;  %v949_v45 = vmul.f32 0.70710677, %v917_v35  ;;  %v902_v25 = vmul.f32 %v2612_v16, %v2758_v15 }
  0xa1   : > { %v2066_v56 = vpop.eup %2065  ;;  %v1070_v50 = vadd.f32 %v1054_v24, %v2489_v1  ;;  %v812_v62 = vadd.f32 %v796_v51, %v759_v43  ;;  %v707_v31 = vadd.f32 %v691_v28, %v654_v26  ;;  %v490_v19 = vadd.f32 %v2572_v38, %v474_v49 }
  0xa2   : > { %v1071_v33 = vadd.f32 %v1055_v54, %v2492_v2  ;;  %v1056_v60 = vadd.f32 %v2755_v17, %v1034_v30  ;;  %v979_v58 = vadd.f32 1.0, %v2066_v56  ;;  %2069 = verf.f32 %v949_v45  ;;  %v2807_v56 = vld [vmem:[#allocation2 + $0xcf] sm:$0xff] }
  0xa3   : > { %1087 = vst [vmem:[%s2780_s11] sm:$0xff] %v1070_v50  ;;  %v865_v1 = vadd.f32 %v849_v34, %v812_v62  ;;  %v760_v51 = vadd.f32 %v744_v41, %v707_v31  ;;  %v797_v32 = vmul.f32 %v2589_v48, %v2667_v57  ;;  %v530_v2 = vmul.f32 %v2576_v40, %v2705_v20 }
  0xa4   : > { %1088 = vst [vmem:[%s2780_s11 + $0x8] sm:$0xff] %v1071_v33  ;;  %v1072_v36 = vadd.f32 %v1056_v60, %v2495_v3  ;;  %v995_v42 = vmul.f32 %v979_v58, %v2730_v0  ;;  %v932_v18 = vmul.f32 0.5, %v916_v22  ;;  %v850_v34 = vmul.f32 %v2596_v53, %v2707_v27  ;;  %v2812_v33 = vld [vmem:[#allocation2 + $0xc9] sm:$0xff] }
  0xa5   : > { %v918_v28 = vadd.f32 %v902_v25, %v865_v1  ;;  %v813_v55 = vadd.f32 %v797_v32, %v760_v51  ;;  %v546_v29 = vadd.f32 %v530_v2, %v490_v19  ;;  %v903_v24 = vmul.f32 %v2612_v16, %v2785_v21 }
  0xa6   : > { %v2068_v41 = vpop.eup %2067  ;;  %1089 = vst [vmem:[%s2780_s11 + $0x10] sm:$0xff] %v1072_v36  ;;  %v1035_v57 = vmul.f32 %v2746_v46, %v995_v42  ;;  %v586_v43 = vmul.f32 %v2582_v44, %v2776_v63  ;;  %v639_v3 = vmul.f32 %v2587_v47, %v2511_v7  ;;  %v933_v22 = vmul.f32 0.5, %v917_v35 }
  0xa7   : > { %v980_v0 = vadd.f32 1.0, %v2068_v41  ;;  %v950_v26 = vmul.f32 0.70710677, %v918_v28  ;;  %v866_v49 = vadd.f32 %v850_v34, %v813_v55  ;;  %v692_v45 = vmul.f32 %v2594_v52, %v2520_v9 }
  0xa8   : > { %v1057_v54 = vadd.f32 %v2755_v17, %v1035_v57  ;;  %v602_v30 = vadd.f32 %v586_v43, %v546_v29  ;;  %v475_v25 = vmul.f32 %v2574_v39, %v2690_v37  ;;  %v745_v35 = vmul.f32 %v2604_v59, %v2529_v11  ;;  %v2834_v43 = vld [vmem:[#allocation2 + $0xe7] sm:$0xff] }
  0xa9   : > { %v996_v50 = vmul.f32 %v980_v0, %v932_v18  ;;  %2071 = verf.f32 %v950_v26  ;;  %v919_v62 = vadd.f32 %v903_v24, %v866_v49  ;;  %v531_v58 = vmul.f32 %v2576_v40, %v2728_v23 }
  0xaa   : > { %v1073_v31 = vadd.f32 %v1057_v54, %v2501_v4  ;;  %v655_v19 = vadd.f32 %v639_v3, %v602_v30  ;;  %v491_v60 = vadd.f32 %v2572_v38, %v475_v25  ;;  %v798_v51 = vmul.f32 %v2589_v48, %v2684_v61 }
  0xab   : > { %v1036_v37 = vmul.f32 %v2746_v46, %v996_v50  ;;  %v951_v1 = vmul.f32 0.70710677, %v919_v62  ;;  %v851_v32 = vmul.f32 %v2596_v53, %v2758_v15  ;;  %v587_v42 = vmul.f32 %v2582_v44, %v2807_v56 }
  0xac   : > { %v2070_v2 = vpop.eup %2069  ;;  %1090 = vst [vmem:[%s2780_s11 + $0x18] sm:$0xff] %v1073_v31  ;;  %v708_v4 = vadd.f32 %v692_v45, %v655_v19  ;;  %v547_v36 = vadd.f32 %v531_v58, %v491_v60  ;;  %v640_v18 = vmul.f32 %v2587_v47, %v2517_v8  ;;  %v904_v61 = vmul.f32 %v2612_v16, %v2812_v33  ;;  %v2839_v45 = vld [vmem:[#allocation2 + $0xd1] sm:$0xff] }
  0xad   : > { %v1058_v55 = vadd.f32 %v2755_v17, %v1036_v37  ;;  %v981_v34 = vadd.f32 1.0, %v2070_v2  ;;  %2073 = verf.f32 %v951_v1  ;;  %v693_v57 = vmul.f32 %v2594_v52, %v2523_v10 }
  0xae   : > { %v761_v29 = vadd.f32 %v745_v35, %v708_v4  ;;  %v603_v41 = vadd.f32 %v587_v42, %v547_v36  ;;  %v476_v24 = vmul.f32 %v2574_v39, %v2705_v20  ;;  %v934_v26 = vmul.f32 0.5, %v918_v28 }
  0xaf   : > { %v1074_v3 = vadd.f32 %v1058_v55, %v2505_v5  ;;  %v997_v0 = vmul.f32 %v981_v34, %v933_v22  ;;  %v746_v49 = vmul.f32 %v2604_v59, %v2532_v12  ;;  %v532_v50 = vmul.f32 %v2576_v40, %v2776_v63 }
  0xb0   : > { %v814_v54 = vadd.f32 %v798_v51, %v761_v29  ;;  %v656_v30 = vadd.f32 %v640_v18, %v603_v41  ;;  %v492_v25 = vadd.f32 %v2572_v38, %v476_v24  ;;  %v935_v35 = vmul.f32 0.5, %v919_v62  ;;  %v2859_v51 = vld [vmem:[#allocation2 + $0xef] sm:$0xff] }
  0xb1   : > { %1091 = vst [vmem:[%s2780_s11 + $0x20] sm:$0xff] %v1074_v3  ;;  %v1037_v20 = vmul.f32 %v2746_v46, %v997_v0  ;;  %v799_v5 = vmul.f32 %v2589_v48, %v2707_v27  ;;  %v852_v28 = vmul.f32 %v2596_v53, %v2785_v21  ;;  %v588_v60 = vmul.f32 %v2582_v44, %v2834_v43 }
  0xb2   : > { %v867_v22 = vadd.f32 %v851_v32, %v814_v54  ;;  %v709_v31 = vadd.f32 %v693_v57, %v656_v30  ;;  %v548_v19 = vadd.f32 %v532_v50, %v492_v25  ;;  %v905_v1 = vmul.f32 %v2612_v16, %v2839_v45 }
  0xb3   : > { %v2072_v58 = vpop.eup %2071  ;;  %v1059_v37 = vadd.f32 %v2755_v17, %v1037_v20  ;;  %v641_v62 = vmul.f32 %v2587_v47, %v2520_v9  ;;  %v477_v27 = vmul.f32 %v2574_v39, %v2728_v23  ;;  %v694_v18 = vmul.f32 %v2594_v52, %v2529_v11 }
  0xb4   : > { %v982_v32 = vadd.f32 1.0, %v2072_v58  ;;  %v920_v2 = vadd.f32 %v904_v61, %v867_v22  ;;  %v762_v4 = vadd.f32 %v746_v49, %v709_v31  ;;  %v604_v36 = vadd.f32 %v588_v60, %v548_v19 }
  0xb5   : > { %v1075_v42 = vadd.f32 %v1059_v37, %v2508_v6  ;;  %v493_v55 = vadd.f32 %v2572_v38, %v477_v27  ;;  %v533_v34 = vmul.f32 %v2576_v40, %v2807_v56  ;;  %v747_v23 = vmul.f32 %v2604_v59, %v2535_v13  ;;  %v2877_v13 = vld [vmem:[#allocation2 + $0xe9] sm:$0xff] }
  0xb6   : > { %v998_v29 = vmul.f32 %v982_v32, %v934_v26  ;;  %v952_v41 = vmul.f32 0.70710677, %v920_v2  ;;  %v815_v57 = vadd.f32 %v799_v5, %v762_v4  ;;  %v657_v61 = vadd.f32 %v641_v62, %v604_v36  ;;  %v2888_v37 = vld [vmem:[#allocation2 + $0x107] sm:$0xff]  ;;  %v2894_v4 = vld [vmem:[#allocation2 + $0xf1] sm:$0xff] }
  0xb7   : > { %v2074_v24 = vpop.eup %2073  ;;  %1092 = vst [vmem:[%s2780_s11 + $0x28] sm:$0xff] %v1075_v42  ;;  %v549_v3 = vadd.f32 %v533_v34, %v493_v55  ;;  %v589_v6 = vmul.f32 %v2582_v44, %v2859_v51  ;;  %v642_v0 = vmul.f32 %v2587_v47, %v2523_v10  ;;  %v800_v25 = vmul.f32 %v2589_v48, %v2758_v15 }
  0xb8   : > { %v1038_v49 = vmul.f32 %v2746_v46, %v998_v29  ;;  %v983_v54 = vadd.f32 1.0, %v2074_v24  ;;  %2075 = verf.f32 %v952_v41  ;;  %v868_v26 = vadd.f32 %v852_v28, %v815_v57  ;;  %v623_v41 = vld [vmem:[#allocation2 + $0xc8] sm:$0xff] }
  0xb9   : > { %v710_v30 = vadd.f32 %v694_v18, %v657_v61  ;;  %v605_v50 = vadd.f32 %v589_v6, %v549_v3  ;;  %v695_v20 = vmul.f32 %v2594_v52, %v2532_v12  ;;  %v853_v19 = vmul.f32 %v2596_v53, %v2812_v33  ;;  %v2905_v57 = vld [vmem:[#allocation2 + $0xe8] sm:$0xff] }
  0xba   : > { %v1060_v5 = vadd.f32 %v2755_v17, %v1038_v49  ;;  %v999_v22 = vmul.f32 %v983_v54, %v935_v35  ;;  %v921_v31 = vadd.f32 %v905_v1, %v868_v26  ;;  %v748_v58 = vmul.f32 %v2604_v59, %v2541_v14  ;;  %v515_v54 = vld [vmem:[#allocation2 + $0xef] sm:$0xff] }
  0xbb   : > { %v763_v60 = vadd.f32 %v747_v23, %v710_v30  ;;  %v658_v28 = vadd.f32 %v642_v0, %v605_v50  ;;  %v478_v15 = vmul.f32 %v2574_v39, %v2776_v63  ;;  %v906_v1 = vmul.f32 %v2612_v16, %v2877_v13  ;;  %v2912_v0 = vld [vmem:[#allocation2 + $0x109] sm:$0xff] }
  0xbc   : > { %v1076_v12 = vadd.f32 %v1060_v5, %v2511_v7  ;;  %v1039_v62 = vmul.f32 %v2746_v46, %v999_v22  ;;  %v953_v35 = vmul.f32 0.70710677, %v921_v31  ;;  %v534_v14 = vmul.f32 %v2576_v40, %v2834_v43  ;;  %v2924_v5 = vld [vmem:[#allocation2 + $0x10f] sm:$0xff] }
  0xbd   : > { %v816_v27 = vadd.f32 %v800_v25, %v763_v60  ;;  %v711_v32 = vadd.f32 %v695_v20, %v658_v28  ;;  %v494_v36 = vadd.f32 %v2572_v38, %v478_v15  ;;  %v936_v42 = vmul.f32 0.5, %v920_v2  ;;  %v3569_v25 = vld [vmem:[#allocation12_spill] sm:$0xff] }
  0xbe   : > { %1093 = vst [vmem:[%s2780_s11 + $0x30] sm:$0xff] %v1076_v12  ;;  %v1061_v63 = vadd.f32 %v2755_v17, %v1039_v62  ;;  %2077 = verf.f32 %v953_v35  ;;  %v801_v7 = vmul.f32 %v2589_v48, %v2785_v21  ;;  %v590_v29 = vmul.f32 %v2582_v44, %v2888_v37  ;;  %v624_v60 = vld [vmem:[#allocation2 + $0xd0] sm:$0xff] }
  0xbf   : > { %v869_v18 = vadd.f32 %v853_v19, %v816_v27  ;;  %v764_v55 = vadd.f32 %v748_v58, %v711_v32  ;;  %v550_v34 = vadd.f32 %v534_v14, %v494_v36  ;;  %v937_v24 = vmul.f32 0.5, %v921_v31  ;;  %v2932_v62 = vld [vmem:[#allocation2 + $0xf0] sm:$0xff]  ;;  %v516_v27 = vld [vmem:[#allocation2 + $0x107] sm:$0xff] }
  0xc0   : > { %v1077_v23 = vadd.f32 %v1061_v63, %v2517_v8  ;;  %v854_v2 = vmul.f32 %v2596_v53, %v2839_v45  ;;  %v907_v61 = vmul.f32 %v2612_v16, %v2894_v4  ;;  %v479_v49 = vmul.f32 %v2574_v39, %v2807_v56  ;;  %v2937_v63 = vld [vmem:[#allocation2 + $0x110] sm:$0xff] }
  0xc1   : > { %v922_v21 = vadd.f32 %v906_v1, %v869_v18  ;;  %v817_v3 = vadd.f32 %v801_v7, %v764_v55  ;;  %v606_v6 = vadd.f32 %v590_v29, %v550_v34  ;;  %v643_v8 = vmul.f32 %v2587_v47, %v623_v41  ;;  %v2944_v29 = vld [vmem:[#allocation2 + $0x127] sm:$0xff] }
  0xc2   : > { %v2076_v26 = vpop.eup %2075  ;;  %1094 = vst [vmem:[%s2780_s11 + $0x38] sm:$0xff] %v1077_v23  ;;  %v696_v30 = vmul.f32 %v2594_v52, %v2905_v57  ;;  %v749_v50 = vmul.f32 %v2604_v59, %v3569_v25  ;;  %v802_v20 = vmul.f32 %v2589_v48, %v2812_v33  ;;  %v855_v56 = vmul.f32 %v2596_v53, %v2877_v13 }
  0xc3   : > { %v984_v22 = vadd.f32 1.0, %v2076_v26  ;;  %v954_v31 = vmul.f32 0.70710677, %v922_v21  ;;  %v870_v19 = vadd.f32 %v854_v2, %v817_v3  ;;  %v659_v28 = vadd.f32 %v643_v8, %v606_v6  ;;  %v2951_v26 = vld [vmem:[#allocation2 + $0x111] sm:$0xff] }
  0xc4   : > { %v908_v58 = vmul.f32 %v2612_v16, %v2912_v0  ;;  %v495_v15 = vadd.f32 %v2572_v38, %v479_v49  ;;  %v535_v12 = vmul.f32 %v2576_v40, %v515_v54  ;;  %v591_v1 = vmul.f32 %v2582_v44, %v2924_v5 }
  0xc5   : > { %v1000_v33 = vmul.f32 %v984_v22, %v936_v42  ;;  %2079 = verf.f32 %v954_v31  ;;  %v923_v35 = vadd.f32 %v907_v61, %v870_v19  ;;  %v712_v32 = vadd.f32 %v696_v30, %v659_v28  ;;  %v2960_v19 = vld [vmem:[#allocation2 + $0x108] sm:$0xff] }
  0xc6   : > { %v551_v36 = vadd.f32 %v535_v12, %v495_v15  ;;  %v644_v14 = vmul.f32 %v2587_v47, %v624_v60  ;;  %v480_v7 = vmul.f32 %v2574_v39, %v2834_v43  ;;  %v938_v55 = vmul.f32 0.5, %v922_v21  ;;  %v2964_v12 = vld [vmem:[#allocation2 + $0x128] sm:$0xff] }
  0xc7   : > { %v1040_v18 = vmul.f32 %v2746_v46, %v1000_v33  ;;  %v955_v34 = vmul.f32 0.70710677, %v923_v35  ;;  %v697_v42 = vmul.f32 %v2594_v52, %v2932_v62  ;;  %v765_v23 = vadd.f32 %v749_v50, %v712_v32 }
  0xc8   : > { %v2078_v41 = vpop.eup %2077  ;;  %v607_v2 = vadd.f32 %v591_v1, %v551_v36  ;;  %v496_v61 = vadd.f32 %v2572_v38, %v480_v7  ;;  %v536_v3 = vmul.f32 %v2576_v40, %v516_v27  ;;  %v750_v43 = vmul.f32 %v2604_v59, %v2937_v63  ;;  %v2974_v36 = vld [vmem:[#allocation2 + $0x12f] sm:$0xff] }
  0xc9   : > { %v1062_v6 = vadd.f32 %v2755_v17, %v1040_v18  ;;  %v985_v49 = vadd.f32 1.0, %v2078_v41  ;;  %2081 = verf.f32 %v955_v34  ;;  %v818_v21 = vadd.f32 %v802_v20, %v765_v23 }
  0xca   : > { %v660_v54 = vadd.f32 %v644_v14, %v607_v2  ;;  %v552_v8 = vadd.f32 %v536_v3, %v496_v61  ;;  %v592_v30 = vmul.f32 %v2582_v44, %v2944_v29  ;;  %v803_v22 = vmul.f32 %v2589_v48, %v2839_v45  ;;  %v2989_v3 = vld [vmem:[#allocation6] ss:$0 sm:$0xff] }
  0xcb   : > { %v1078_v25 = vadd.f32 %v1062_v6, %v2520_v9  ;;  %v1001_v50 = vmul.f32 %v985_v49, %v937_v24  ;;  %v856_v31 = vmul.f32 %v2596_v53, %v2894_v4  ;;  %v871_v60 = vadd.f32 %v855_v56, %v818_v21 }
  0xcc   : > { %v713_v20 = vadd.f32 %v697_v42, %v660_v54  ;;  %v608_v28 = vadd.f32 %v592_v30, %v552_v8  ;;  %v645_v15 = vmul.f32 %v2587_v47, %v2905_v57  ;;  %v939_v24 = vmul.f32 0.5, %v923_v35  ;;  %v2984_v42 = vld [vmem:[#allocation2 + $0x129] sm:$0xff] }
  0xcd   : > { %1095 = vst [vmem:[%s2780_s11 + $0x40] sm:$0xff] %v1078_v25  ;;  %v1041_v9 = vmul.f32 %v2746_v46, %v1001_v50  ;;  %v909_v45 = vmul.f32 %v2612_v16, %v2951_v26  ;;  %v481_v33 = vmul.f32 %v2574_v39, %v2859_v51  ;;  %v924_v1 = vadd.f32 %v908_v58, %v871_v60  ;;  %v2998_v54 = vld [vmem:[#allocation2 + $0x130] sm:$0xff]  ;;  %v3003_v25 = vld [vmem:[#allocation6 + $0x3] ss:$0 sm:$0xff] }
  0xce   : > { %v766_v27 = vadd.f32 %v750_v43, %v713_v20  ;;  %v661_v56 = vadd.f32 %v645_v15, %v608_v28  ;;  %v698_v32 = vmul.f32 %v2594_v52, %v2960_v19  ;;  %v751_v35 = vmul.f32 %v2604_v59, %v2964_v12  ;;  %v3010_v15 = vld [vmem:[#allocation6 + $0x6] ss:$0 sm:$0xff] }
  0xcf   : > { %v2080_v57 = vpop.eup %2079  ;;  %v1063_v14 = vadd.f32 %v2755_v17, %v1041_v9  ;;  %v497_v7 = vadd.f32 %v2572_v38, %v481_v33  ;;  %v537_v18 = vmul.f32 %v2576_v40, %v2924_v5  ;;  %v956_v51 = vmul.f32 0.70710677, %v924_v1  ;;  %v3012_v9 = vld [vmem:[#allocation2 + $0x147] sm:$0xff]  ;;  %v3014_v33 = vld [vmem:[#allocation2 + $0x131] sm:$0xff] }
  0xd0   : > { %v986_v39 = vadd.f32 1.0, %v2080_v57  ;;  %v819_v58 = vadd.f32 %v803_v22, %v766_v27  ;;  %v804_v34 = vmul.f32 %v2589_v48, %v2877_v13  ;;  %v714_v23 = vadd.f32 %v698_v32, %v661_v56  ;;  %v1107_v27 = vld [vmem:[#allocation2 + $0x10f] sm:$0xff]  ;;  %v3023_v32 = vld [vmem:[#allocation6 + $0x1] ss:$0 sm:$0xff] }
  0xd1   : > { %v1079_v41 = vadd.f32 %v1063_v14, %v2523_v10  ;;  %v553_v2 = vadd.f32 %v537_v18, %v497_v7  ;;  %v593_v61 = vmul.f32 %v2582_v44, %v2974_v36  ;;  %2083 = verf.f32 %v956_v51  ;;  %v3027_v18 = vld [vmem:[#allocation6 + $0x4] ss:$0 sm:$0xff] }
  0xd2   : > { %v1002_v6 = vmul.f32 %v986_v39, %v938_v55  ;;  %v872_v40 = vadd.f32 %v856_v31, %v819_v58  ;;  %v857_v5 = vmul.f32 %v2596_v53, %v2912_v0  ;;  %v767_v13 = vadd.f32 %v751_v35, %v714_v23  ;;  %v3031_v39 = vld [vmem:[#allocation2 + $0x148] sm:$0xff] }
  0xd3   : > { %v2082_v49 = vpop.eup %2081  ;;  %1096 = vst [vmem:[%s2780_s11 + $0x48] sm:$0xff] %v1079_v41  ;;  %v910_v43 = vmul.f32 %v2612_v16, %v2984_v42  ;;  %v609_v10 = vadd.f32 %v593_v61, %v553_v2  ;;  %v646_v21 = vmul.f32 %v2587_v47, %v2932_v62  ;;  %v1126_v30 = vmul.f32 %v2989_v3, %v2888_v37  ;;  %v3041_v2 = vld [vmem:[#allocation6 + $0x2] ss:$0 sm:$0xff]  ;;  %v3043_v61 = vld [vmem:[#allocation6 + $0x5] ss:$0 sm:$0xff] }
  0xd4   : > { %v1042_v44 = vmul.f32 %v2746_v46, %v1002_v6  ;;  %v987_v55 = vadd.f32 1.0, %v2082_v49  ;;  %v925_v8 = vadd.f32 %v909_v45, %v872_v40  ;;  %v940_v50 = vmul.f32 0.5, %v924_v1  ;;  %v2123_v40 = vld [vmem:[#allocation2 + $0xd0] sm:$0xff]  ;;  %v3049_v49 = vld [vmem:[#allocation6 + $0x8] ss:$0 sm:$0xff] }
  0xd5   : > { %v820_v22 = vadd.f32 %v804_v34, %v767_v13  ;;  %v662_v31 = vadd.f32 %v646_v21, %v609_v10  ;;  %v699_v60 = vmul.f32 %v2594_v52, %v2937_v63  ;;  %v752_v28 = vmul.f32 %v2604_v59, %v2998_v54  ;;  %v3051_v13 = vld [vmem:[#allocation2 + $0x149] sm:$0xff] }
  0xd6   : > { %v1064_v20 = vadd.f32 %v2755_v17, %v1042_v44  ;;  %v1003_v47 = vmul.f32 %v987_v55, %v939_v24  ;;  %v957_v62 = vmul.f32 0.70710677, %v925_v8  ;;  %v1142_v1 = vadd.f32 %v2572_v38, %v1126_v30  ;;  %v1219_v55 = vld [vmem:[#allocation2 + $0x14f] sm:$0xff] }
  0xd7   : > { %v873_v37 = vadd.f32 %v857_v5, %v820_v22  ;;  %v715_v45 = vadd.f32 %v699_v60, %v662_v31  ;;  %v1182_v52 = vmul.f32 %v3003_v25, %v2944_v29  ;;  %v805_v59 = vmul.f32 %v2589_v48, %v2894_v4  ;;  %v3029_v29 = vld [vmem:[#allocation6 + $0x7] ss:$0 sm:$0xff] }
  0xd8   : > { %v1080_v24 = vadd.f32 %v1064_v20, %v2529_v11  ;;  %v1043_v56 = vmul.f32 %v2746_v46, %v1003_v47  ;;  %2085 = verf.f32 %v957_v62  ;;  %v1238_v7 = vmul.f32 %v3010_v15, %v3012_v9 }
  0xd9   : > { %v926_v57 = vadd.f32 %v910_v43, %v873_v37  ;;  %v768_v14 = vadd.f32 %v752_v28, %v715_v45  ;;  %v1198_v35 = vadd.f32 %v1182_v52, %v1142_v1  ;;  %v941_v51 = vmul.f32 0.5, %v925_v8  ;;  %v1108_v43 = vld [vmem:[#allocation2 + $0x127] sm:$0xff] }
  0xda   : > { %1097 = vst [vmem:[%s2780_s11 + $0x50] sm:$0xff] %v1080_v24  ;;  %v1065_v11 = vadd.f32 %v2755_v17, %v1043_v56  ;;  %v858_v48 = vmul.f32 %v2596_v53, %v2951_v26  ;;  %v911_v4 = vmul.f32 %v2612_v16, %v3014_v33  ;;  %v1291_v23 = vmul.f32 %v3023_v32, %v2960_v19  ;;  %v1022_v56 = vld [vmem:[%s2478_s13 + $0x60] sm:$0xff] }
  0xdb   : > { %v958_v58 = vmul.f32 0.70710677, %v926_v57  ;;  %v821_v34 = vadd.f32 %v805_v59, %v768_v14  ;;  %v1254_v41 = vadd.f32 %v1238_v7, %v1198_v35  ;;  %v2084_v6 = vpop.eup %2083  ;;  %v1344_v53 = vmul.f32 %v3027_v18, %v2964_v12  ;;  %v3082_v14 = vld [vmem:[%s3544_s2] ss:$0 sm:$0xff] }
  0xdc   : > { %v1081_v5 = vadd.f32 %v2123_v40, %v1065_v11  ;;  %v1397_v16 = vmul.f32 %v3029_v29, %v3031_v39  ;;  %v1127_v19 = vmul.f32 %v2989_v3, %v1107_v27  ;;  %v988_v10 = vadd.f32 1.0, %v2084_v6  ;;  %v3074_v27 = vld [vmem:[#allocation2 + $0x167] sm:$0xff] }
  0xdd   : > { %2087 = verf.f32 %v958_v58  ;;  %v874_v21 = vadd.f32 %v858_v48, %v821_v34  ;;  %v1307_v44 = vadd.f32 %v1291_v23, %v1254_v41  ;;  %v1450_v8 = vmul.f32 %v3041_v2, %v2912_v0  ;;  %v3090_v41 = vld [vmem:[#allocation2 + $0x151] sm:$0xff] }
  0xde   : > { %1098 = vst [vmem:[%s2780_s11 + $0x58] sm:$0xff] %v1081_v5  ;;  %v1503_v30 = vmul.f32 %v3043_v61, %v2984_v42  ;;  %v1143_v22 = vadd.f32 %v2572_v38, %v1127_v19  ;;  %v1183_v31 = vmul.f32 %v3003_v25, %v2974_v36  ;;  %v1004_v60 = vmul.f32 %v988_v10, %v940_v50  ;;  %v3072_v50 = vld [vmem:[#allocation2 + $0x150] sm:$0xff] }
  0xdf   : > { %v3062_v20 = vadd.f32 %v911_v4, %v874_v21  ;;  %v1360_v47 = vadd.f32 %v1344_v53, %v1307_v44  ;;  %v1556_v62 = vmul.f32 %v3049_v49, %v3051_v13  ;;  %v942_v28 = vmul.f32 0.5, %v926_v57  ;;  %v1109_v4 = vld [vmem:[#allocation2 + $0x12f] sm:$0xff] }
  0xe0   : > { %v1199_v37 = vadd.f32 %v1183_v31, %v1143_v22  ;;  %v1239_v0 = vmul.f32 %v3010_v15, %v1219_v55  ;;  %v1128_v45 = vmul.f32 %v2989_v3, %v1108_v43  ;;  %v1044_v1 = vmul.f32 %v2746_v46, %v1004_v60  ;;  %v1023_v22 = vld [vmem:[%s2478_s13 + $0x68] sm:$0xff] }
  0xe1   : > { %v959_v38 = vmul.f32 0.70710677, %v3062_v20  ;;  %v1413_v52 = vadd.f32 %v1397_v16, %v1360_v47  ;;  %v1292_v36 = vmul.f32 %v3023_v32, %v2937_v63  ;;  %v1345_v57 = vmul.f32 %v3027_v18, %v2998_v54 }
  0xe2   : > { %v2086_v24 = vpop.eup %2085  ;;  %v1255_v59 = vadd.f32 %v1239_v0, %v1199_v37  ;;  %v1144_v35 = vadd.f32 %v3082_v14, %v1128_v45  ;;  %v1184_v63 = vmul.f32 %v3003_v25, %v3012_v9  ;;  %v1066_v7 = vadd.f32 %v2755_v17, %v1044_v1  ;;  %v3112_v37 = vld [vmem:[#allocation2 + $0x16f] sm:$0xff] }
  0xe3   : > { %v989_v11 = vadd.f32 1.0, %v2086_v24  ;;  %2089 = verf.f32 %v959_v38  ;;  %v1466_v48 = vadd.f32 %v1450_v8, %v1413_v52  ;;  %v1398_v34 = vmul.f32 %v3029_v29, %v3072_v50 }
  0xe4   : > { %v1308_v58 = vadd.f32 %v1292_v36, %v1255_v59  ;;  %v1200_v23 = vadd.f32 %v1184_v63, %v1144_v35  ;;  %v1240_v6 = vmul.f32 %v3010_v15, %v3074_v27  ;;  %v1082_v40 = vadd.f32 %v1066_v7, %v1022_v56  ;;  %v1110_v35 = vld [vmem:[#allocation2 + $0x147] sm:$0xff] }
  0xe5   : > { %v1005_v9 = vmul.f32 %v989_v11, %v941_v51  ;;  %v1519_v5 = vadd.f32 %v1503_v30, %v1466_v48  ;;  %v1451_v53 = vmul.f32 %v3041_v2, %v2951_v26  ;;  %v1504_v19 = vmul.f32 %v3043_v61, %v3014_v33  ;;  %v3106_v30 = vld [vmem:[#allocation2 + $0x168] sm:$0xff] }
  0xe6   : > { %v1361_v16 = vadd.f32 %v1345_v57, %v1308_v58  ;;  %v1256_v43 = vadd.f32 %v1240_v6, %v1200_v23  ;;  %v1293_v10 = vmul.f32 %v3023_v32, %v2964_v12  ;;  %1099 = vst [vmem:[%s2780_s11 + $0x60] sm:$0xff] %v1082_v40  ;;  %v1557_v51 = vmul.f32 %v3049_v49, %v3090_v41  ;;  %v3134_v40 = vld [vmem:[#allocation2 + $0x170] sm:$0xff] }
  0xe7   : > { %v2088_v21 = vpop.eup %2087  ;;  %v1045_v44 = vmul.f32 %v2746_v46, %v1005_v9  ;;  %v3102_v8 = vadd.f32 %v1556_v62, %v1519_v5  ;;  %v1129_v26 = vmul.f32 %v2989_v3, %v1109_v4  ;;  %v1346_v12 = vmul.f32 %v3027_v18, %v3031_v39  ;;  %v1024_v4 = vld [vmem:[%s2478_s13 + $0x70] sm:$0xff] }
  0xe8   : > { %v990_v31 = vadd.f32 1.0, %v2088_v21  ;;  %v1414_v60 = vadd.f32 %v1398_v34, %v1361_v16  ;;  %v1309_v47 = vadd.f32 %v1293_v10, %v1256_v43  ;;  %v1185_v1 = vmul.f32 %v3003_v25, %v1219_v55 }
  0xe9   : > { %v1067_v0 = vadd.f32 %v2755_v17, %v1045_v44  ;;  %v1604_v62 = vmul.f32 0.70710677, %v3102_v8  ;;  %v1145_v45 = vadd.f32 %v3082_v14, %v1129_v26  ;;  %v1399_v24 = vmul.f32 %v3029_v29, %v3106_v30  ;;  %v1222_v26 = vld [vmem:[#allocation2 + $0x187] sm:$0xff] }
  0xea   : > { %v1006_v38 = vmul.f32 %v990_v31, %v942_v28  ;;  %v1467_v52 = vadd.f32 %v1451_v53, %v1414_v60  ;;  %v1362_v36 = vadd.f32 %v1346_v12, %v1309_v47  ;;  %v1241_v57 = vmul.f32 %v3010_v15, %v3112_v37  ;;  %v3125_v28 = vld [vmem:[#allocation2 + $0x169] sm:$0xff]  ;;  %v3144_v31 = vld [vmem:[#allocation2 + $0x171] sm:$0xff] }
  0xeb   : > { %v1083_v56 = vadd.f32 %v1067_v0, %v1023_v22  ;;  %2091 = verf.f32 %v1604_v62  ;;  %v1201_v59 = vadd.f32 %v1185_v1, %v1145_v45  ;;  %v1452_v55 = vmul.f32 %v3041_v2, %v2984_v42  ;;  %v1111_v62 = vld [vmem:[#allocation2 + $0x14f] sm:$0xff]  ;;  %v1025_v45 = vld [vmem:[%s2478_s13 + $0x78] sm:$0xff] }
  0xec   : > { %v1046_v63 = vmul.f32 %v2746_v46, %v1006_v38  ;;  %v1520_v7 = vadd.f32 %v1504_v19, %v1467_v52  ;;  %v1415_v11 = vadd.f32 %v1399_v24, %v1362_v36  ;;  %v943_v58 = vmul.f32 0.5, %v3062_v20 }
  0xed   : > { %v2090_v48 = vpop.eup %2089  ;;  %1100 = vst [vmem:[%s2780_s11 + $0x68] sm:$0xff] %v1083_v56  ;;  %v1505_v34 = vmul.f32 %v3043_v61, %v3051_v13  ;;  %v1257_v23 = vadd.f32 %v1241_v57, %v1201_v59  ;;  %v1294_v6 = vmul.f32 %v3023_v32, %v2998_v54  ;;  %v1558_v16 = vmul.f32 %v3049_v49, %v3125_v28 }
  0xee   : > { %v1068_v9 = vadd.f32 %v2755_v17, %v1046_v63  ;;  %v991_v5 = vadd.f32 1.0, %v2090_v48  ;;  %v1573_v42 = vadd.f32 %v1557_v51, %v1520_v7  ;;  %v1468_v53 = vadd.f32 %v1452_v55, %v1415_v11  ;;  %v3163_v11 = vld [vmem:[#allocation2 + $0x188] sm:$0xff] }
  0xef   : > { %v1310_v19 = vadd.f32 %v1294_v6, %v1257_v23  ;;  %v1347_v20 = vmul.f32 %v3027_v18, %v3072_v50  ;;  %v1130_v43 = vmul.f32 %v2989_v3, %v1110_v35  ;;  %v1400_v44 = vmul.f32 %v3029_v29, %v3134_v40  ;;  %v3168_v6 = vld [vmem:[#allocation2 + $0x189] sm:$0xff] }
  0xf0   : > { %v1084_v10 = vadd.f32 %v1068_v9, %v1024_v4  ;;  %v1007_v54 = vmul.f32 %v991_v5, %v943_v58  ;;  %v1605_v21 = vmul.f32 0.70710677, %v1573_v42  ;;  %v1521_v51 = vadd.f32 %v1505_v34, %v1468_v53  ;;  %v3170_v9 = vld [vmem:[#allocation2 + $0x18f] sm:$0xff]  ;;  %v1112_v5 = vld [vmem:[#allocation2 + $0x167] sm:$0xff] }
  0xf1   : > { %v1363_v22 = vadd.f32 %v1347_v20, %v1310_v19  ;;  %v1146_v60 = vadd.f32 %v3082_v14, %v1130_v43  ;;  %v1186_v47 = vmul.f32 %v3003_v25, %v3074_v27  ;;  %v1453_v0 = vmul.f32 %v3041_v2, %v3014_v33 }
  0xf2   : > { %1101 = vst [vmem:[%s2780_s11 + $0x70] sm:$0xff] %v1084_v10  ;;  %v1047_v12 = vmul.f32 %v2746_v46, %v1007_v54  ;;  %2093 = verf.f32 %v1605_v21  ;;  %v1574_v1 = vadd.f32 %v1558_v16, %v1521_v51  ;;  %v1242_v36 = vmul.f32 %v3010_v15, %v1222_v26 }
  0xf3   : > { %v1416_v38 = vadd.f32 %v1400_v44, %v1363_v22  ;;  %v1202_v52 = vadd.f32 %v1186_v47, %v1146_v60  ;;  %v1588_v56 = vmul.f32 0.5, %v3102_v8  ;;  %v1506_v27 = vmul.f32 %v3043_v61, %v3090_v41  ;;  %v1942_v22 = vld [vmem:[%s2478_s13 + $0x80] sm:$0xff] }
  0xf4   : > { %v1069_v24 = vadd.f32 %v2755_v17, %v1047_v12  ;;  %v1559_v59 = vmul.f32 %v3049_v49, %v3144_v31  ;;  %v1606_v35 = vmul.f32 0.70710677, %v1574_v1  ;;  %v1295_v7 = vmul.f32 %v3023_v32, %v3031_v39  ;;  %v3188_v12 = vld [vmem:[#allocation2 + $0x190] sm:$0xff] }
  0xf5   : > { %v2092_v57 = vpop.eup %2091  ;;  %v1469_v33 = vadd.f32 %v1453_v0, %v1416_v38  ;;  %v1258_v63 = vadd.f32 %v1242_v36, %v1202_v52  ;;  %v1589_v4 = vmul.f32 0.5, %v1573_v42  ;;  %v1131_v8 = vmul.f32 %v2989_v3, %v1111_v62  ;;  %v3195_v52 = vld [vmem:[#allocation2 + $0x1a7] sm:$0xff] }
  0xf6   : > { %v1085_v55 = vadd.f32 %v1069_v24, %v1025_v45  ;;  %v1636_v48 = vadd.f32 1.0, %v2092_v57  ;;  %2095 = verf.f32 %v1606_v35  ;;  %v1348_v23 = vmul.f32 %v3027_v18, %v3106_v30  ;;  %v3202_v35 = vld [vmem:[#allocation2 + $0x191] sm:$0xff] }
  0xf7   : > { %v1522_v58 = vadd.f32 %v1506_v27, %v1469_v33  ;;  %v1311_v34 = vadd.f32 %v1295_v7, %v1258_v63  ;;  %v1401_v53 = vmul.f32 %v3029_v29, %v3163_v11  ;;  %v1147_v42 = vadd.f32 %v3082_v14, %v1131_v8 }
  0xf8   : > { %1102 = vst [vmem:[%s2780_s11 + $0x78] sm:$0xff] %v1085_v55  ;;  %v1652_v39 = vmul.f32 %v1636_v48, %v1588_v56  ;;  %v1187_v16 = vmul.f32 %v3003_v25, %v3112_v37  ;;  %v1454_v43 = vmul.f32 %v3041_v2, %v3051_v13  ;;  %v1507_v10 = vmul.f32 %v3043_v61, %v3125_v28  ;;  %v1113_v56 = vld [vmem:[#allocation2 + $0x16f] sm:$0xff] }
  0xf9   : > { %v1575_v19 = vadd.f32 %v1559_v59, %v1522_v58  ;;  %v1364_v20 = vadd.f32 %v1348_v23, %v1311_v34  ;;  %v1560_v21 = vmul.f32 %v3049_v49, %v3168_v6  ;;  %v1243_v51 = vmul.f32 %v3010_v15, %v3170_v9  ;;  %v3216_v58 = vld [vmem:[%s3545_s3] ss:$0 sm:$0xff] }
  0xfa   : > { %v1686_v54 = vmul.f32 %v2746_v46, %v1652_v39  ;;  %v1203_v44 = vadd.f32 %v1187_v16, %v1147_v42  ;;  %v1590_v60 = vmul.f32 0.5, %v1574_v1  ;;  %v1132_v13 = vmul.f32 %v2989_v3, %v1112_v5 }
  0xfb   : > { %v1607_v37 = vmul.f32 0.70710677, %v1575_v19  ;;  %v1417_v47 = vadd.f32 %v1401_v53, %v1364_v20  ;;  %v1296_v46 = vmul.f32 %v3023_v32, %v3072_v50  ;;  %v1188_v38 = vmul.f32 %v3003_v25, %v1222_v26  ;;  %v1943_v53 = vld [vmem:[%s2478_s13 + $0x88] sm:$0xff] }
  0xfc   : > { %v2094_v0 = vpop.eup %2093  ;;  %v1702_v62 = vadd.f32 %v2755_v17, %v1686_v54  ;;  %v1259_v45 = vadd.f32 %v1243_v51, %v1203_v44  ;;  %v1148_v24 = vadd.f32 %v3082_v14, %v1132_v13  ;;  %v1349_v17 = vmul.f32 %v3027_v18, %v3134_v40  ;;  %v3233_v51 = vld [vmem:[#allocation2 + $0x1af] sm:$0xff] }
  0xfd   : > { %v1637_v36 = vadd.f32 1.0, %v2094_v0  ;;  %2097 = verf.f32 %v1607_v37  ;;  %v1470_v1 = vadd.f32 %v1454_v43, %v1417_v47  ;;  %v1402_v57 = vmul.f32 %v3029_v29, %v3188_v12  ;;  %v3228_v43 = vld [vmem:[%s3546_s4] ss:$0 sm:$0xff]  ;;  %v3235_v37 = vld [vmem:[#allocation2 + $0x1a9] sm:$0xff] }
  0xfe   : > { %v1718_v27 = vadd.f32 %v1942_v22, %v1702_v62  ;;  %v1312_v59 = vadd.f32 %v1296_v46, %v1259_v45  ;;  %v1204_v33 = vadd.f32 %v1188_v38, %v1148_v24  ;;  %v1244_v63 = vmul.f32 %v3010_v15, %v3195_v52  ;;  %v1114_v46 = vld [vmem:[#allocation2 + $0x187] sm:$0xff] }
  0xff   : > { %v1653_v50 = vmul.f32 %v1637_v36, %v1589_v4  ;;  %v1523_v26 = vadd.f32 %v1507_v10, %v1470_v1  ;;  %v1455_v55 = vmul.f32 %v3041_v2, %v3090_v41  ;;  %v1508_v48 = vmul.f32 %v3043_v61, %v3144_v31 }
 0x100   : > { %1958 = vst [vmem:[%s2780_s11 + $0x80] sm:$0xff] %v1718_v27  ;;  %v1365_v7 = vadd.f32 %v1349_v17, %v1312_v59  ;;  %v1297_v8 = vmul.f32 %v3023_v32, %v3106_v30  ;;  %v2096_v4 = vpop.eup %2095  ;;  %v1260_v5 = vadd.f32 %v1244_v63, %v1204_v33  ;;  %v1133_v39 = vmul.f32 %v2989_v3, %v1113_v56  ;;  %v3223_v30 = vld [vmem:[#allocation2 + $0x1a8] sm:$0xff]  ;;  %v1944_v56 = vld [vmem:[%s2478_s13 + $0x90] sm:$0xff] }
 0x101   : > { %v1687_v34 = vmul.f32 %v3216_v58, %v1653_v50  ;;  %v1576_v23 = vadd.f32 %v1560_v21, %v1523_v26  ;;  %v1638_v41 = vadd.f32 1.0, %v2096_v4  ;;  %v1591_v42 = vmul.f32 0.5, %v1575_v19 }
 0x102   : > { %v1418_v16 = vadd.f32 %v1402_v57, %v1365_v7  ;;  %v1561_v20 = vmul.f32 %v3049_v49, %v3202_v35  ;;  %v1313_v21 = vadd.f32 %v1297_v8, %v1260_v5  ;;  %v1350_v44 = vmul.f32 %v3027_v18, %v3163_v11 }
 0x103   : > { %v1703_v10 = vadd.f32 %v3228_v43, %v1687_v34  ;;  %v1608_v54 = vmul.f32 0.70710677, %v1576_v23  ;;  %v1654_v19 = vmul.f32 %v1638_v41, %v1590_v60  ;;  %v1149_v47 = vadd.f32 %v3082_v14, %v1133_v39  ;;  %v3261_v39 = vld [vmem:[#allocation2 + $0x1c7] sm:$0xff] }
 0x104   : > { %v1471_v22 = vadd.f32 %v1455_v55, %v1418_v16  ;;  %v1189_v13 = vmul.f32 %v3003_v25, %v3170_v9  ;;  %v1366_v62 = vadd.f32 %v1350_v44, %v1313_v21  ;;  %v1403_v45 = vmul.f32 %v3029_v29, %v3223_v30  ;;  %v3263_v16 = vld [vmem:[#allocation2 + $0x1b1] sm:$0xff] }
 0x105   : > { %v1719_v0 = vadd.f32 %v1943_v53, %v1703_v10  ;;  %2099 = verf.f32 %v1608_v54  ;;  %v1688_v38 = vmul.f32 %v3216_v58, %v1654_v19  ;;  %v1245_v1 = vmul.f32 %v3010_v15, %v3233_v51  ;;  %v1115_v53 = vld [vmem:[#allocation2 + $0x18f] sm:$0xff]  ;;  %v1945_v21 = vld [vmem:[%s2478_s13 + $0x98] sm:$0xff] }
 0x106   : > { %v1524_v36 = vadd.f32 %v1508_v48, %v1471_v22  ;;  %v1205_v60 = vadd.f32 %v1189_v13, %v1149_v47  ;;  %v1419_v27 = vadd.f32 %v1403_v45, %v1366_v62  ;;  %v1456_v9 = vmul.f32 %v3041_v2, %v3125_v28  ;;  %v3256_v48 = vld [vmem:[#allocation2 + $0x1b0] sm:$0xff] }
 0x107   : > { %v2098_v24 = vpop.eup %2097  ;;  %1959 = vst [vmem:[%s2780_s11 + $0x88] sm:$0xff] %v1719_v0  ;;  %v1509_v59 = vmul.f32 %v3043_v61, %v3168_v6  ;;  %v1562_v17 = vmul.f32 %v3049_v49, %v3235_v37  ;;  %v1704_v57 = vadd.f32 %v3228_v43, %v1688_v38  ;;  %v1592_v63 = vmul.f32 0.5, %v1576_v23 }
 0x108   : > { %v1639_v50 = vadd.f32 1.0, %v2098_v24  ;;  %v1577_v26 = vadd.f32 %v1561_v20, %v1524_v36  ;;  %v1261_v33 = vadd.f32 %v1245_v1, %v1205_v60  ;;  %v1472_v7 = vadd.f32 %v1456_v9, %v1419_v27  ;;  %v3285_v60 = vld [vmem:[#allocation2 + $0x1cf] sm:$0xff] }
 0x109   : > { %v1298_v55 = vmul.f32 %v3023_v32, %v3134_v40  ;;  %v1134_v28 = vmul.f32 %v2989_v3, %v1114_v46  ;;  %v1720_v8 = vadd.f32 %v1944_v56, %v1704_v57  ;;  %v1351_v5 = vmul.f32 %v3027_v18, %v3188_v12  ;;  %v3287_v56 = vld [vmem:[#allocation2 + $0x1c8] sm:$0xff] }
 0x10a   : > { %v1655_v4 = vmul.f32 %v1639_v50, %v1591_v42  ;;  %v1609_v34 = vmul.f32 0.70710677, %v1577_v26  ;;  %v1525_v23 = vadd.f32 %v1509_v59, %v1472_v7  ;;  %v1190_v20 = vmul.f32 %v3003_v25, %v3195_v52  ;;  %v1116_v50 = vld [vmem:[#allocation2 + $0x1a7] sm:$0xff] }
 0x10b   : > { %v1314_v41 = vadd.f32 %v1298_v55, %v1261_v33  ;;  %v1150_v40 = vadd.f32 %v3082_v14, %v1134_v28  ;;  %1960 = vst [vmem:[%s2780_s11 + $0x90] sm:$0xff] %v1720_v8  ;;  %v1404_v42 = vmul.f32 %v3029_v29, %v3256_v48  ;;  %v1457_v54 = vmul.f32 %v3041_v2, %v3144_v31  ;;  %v3295_v7 = vld [vmem:[#allocation2 + $0x1c9] sm:$0xff] }
 0x10c   : > { %v1689_v10 = vmul.f32 %v3216_v58, %v1655_v4  ;;  %2101 = verf.f32 %v1609_v34  ;;  %v1578_v44 = vadd.f32 %v1562_v17, %v1525_v23  ;;  %v1246_v47 = vmul.f32 %v3010_v15, %v3261_v39  ;;  %v3308_v23 = vld [vmem:[#allocation2 + $0x1d0] sm:$0xff] }
 0x10d   : > { %v1367_v19 = vadd.f32 %v1351_v5, %v1314_v41  ;;  %v1206_v22 = vadd.f32 %v1190_v20, %v1150_v40  ;;  %v1510_v52 = vmul.f32 %v3043_v61, %v3202_v35  ;;  %v1563_v0 = vmul.f32 %v3049_v49, %v3263_v16  ;;  %v1946_v41 = vld [vmem:[%s2478_s13 + $0xa0] sm:$0xff] }
 0x10e   : > { %v1705_v13 = vadd.f32 %v3228_v43, %v1689_v10  ;;  %v1135_v62 = vmul.f32 %v2989_v3, %v1115_v53  ;;  %v1610_v31 = vmul.f32 0.70710677, %v1578_v44  ;;  %v1299_v36 = vmul.f32 %v3023_v32, %v3163_v11 }
 0x10f   : > { %v2100_v45 = vpop.eup %2099  ;;  %v1420_v46 = vadd.f32 %v1404_v42, %v1367_v19  ;;  %v1262_v38 = vadd.f32 %v1246_v47, %v1206_v22  ;;  %v1191_v9 = vmul.f32 %v3003_v25, %v3233_v51  ;;  %v1352_v57 = vmul.f32 %v3027_v18, %v3223_v30 }
 0x110   : > { %v1721_v1 = vadd.f32 %v1945_v21, %v1705_v13  ;;  %v1640_v24 = vadd.f32 1.0, %v2100_v45  ;;  %v1151_v27 = vadd.f32 %v3082_v14, %v1135_v62  ;;  %2103 = verf.f32 %v1610_v31  ;;  %v1117_v62 = vld [vmem:[#allocation2 + $0x1af] sm:$0xff] }
 0x111   : > { %v1473_v59 = vadd.f32 %v1457_v54, %v1420_v46  ;;  %v1315_v17 = vadd.f32 %v1299_v36, %v1262_v38  ;;  %v1593_v33 = vmul.f32 0.5, %v1577_v26  ;;  %v1247_v28 = vmul.f32 %v3010_v15, %v3285_v60  ;;  %v3321_v46 = vld [vmem:[#allocation2 + $0x1d1] sm:$0xff] }
 0x112   : > { %1961 = vst [vmem:[%s2780_s11 + $0x98] sm:$0xff] %v1721_v1  ;;  %v1656_v11 = vmul.f32 %v1640_v24, %v1592_v63  ;;  %v1207_v55 = vadd.f32 %v1191_v9, %v1151_v27  ;;  %v1405_v51 = vmul.f32 %v3029_v29, %v3287_v56  ;;  %v1458_v34 = vmul.f32 %v3041_v2, %v3168_v6 }
 0x113   : > { %v1526_v8 = vadd.f32 %v1510_v52, %v1473_v59  ;;  %v1368_v4 = vadd.f32 %v1352_v57, %v1315_v17  ;;  %v1511_v63 = vmul.f32 %v3043_v61, %v3235_v37  ;;  %v1300_v53 = vmul.f32 %v3023_v32, %v3188_v12 }
 0x114   : > { %v1690_v5 = vmul.f32 %v3216_v58, %v1656_v11  ;;  %v1263_v26 = vadd.f32 %v1247_v28, %v1207_v55  ;;  %v1564_v10 = vmul.f32 %v3049_v49, %v3295_v7  ;;  %v1136_v42 = vmul.f32 %v2989_v3, %v1116_v50  ;;  %v1947_v55 = vld [vmem:[%s2478_s13 + $0xa8] sm:$0xff] }
 0x115   : > { %v1579_v40 = vadd.f32 %v1563_v0, %v1526_v8  ;;  %v1421_v20 = vadd.f32 %v1405_v51, %v1368_v4  ;;  %v1594_v21 = vmul.f32 0.5, %v1578_v44  ;;  %v1353_v22 = vmul.f32 %v3027_v18, %v3256_v48  ;;  %v3319_v0 = vld [vmem:[#allocation2 + $0x1e7] sm:$0xff]  ;;  %v3340_v51 = vld [vmem:[#allocation2 + $0x1ef] sm:$0xff] }
 0x116   : > { %v2102_v6 = vpop.eup %2101  ;;  %v1706_v54 = vadd.f32 %v3228_v43, %v1690_v5  ;;  %v1316_v19 = vadd.f32 %v1300_v53, %v1263_v26  ;;  %v1406_v52 = vmul.f32 %v3029_v29, %v3308_v23  ;;  %v1152_v44 = vadd.f32 %v3082_v14, %v1136_v42 }
 0x117   : > { %v1641_v12 = vadd.f32 1.0, %v2102_v6  ;;  %v1611_v47 = vmul.f32 0.70710677, %v1579_v40  ;;  %v1474_v13 = vadd.f32 %v1458_v34, %v1421_v20  ;;  %v1192_v38 = vmul.f32 %v3003_v25, %v3261_v39 }
 0x118   : > { %v1722_v45 = vadd.f32 %v1946_v41, %v1706_v54  ;;  %v1369_v31 = vadd.f32 %v1353_v22, %v1316_v19  ;;  %v1459_v24 = vmul.f32 %v3041_v2, %v3202_v35  ;;  %v1512_v9 = vmul.f32 %v3043_v61, %v3263_v16  ;;  %v1118_v19 = vld [vmem:[#allocation2 + $0x1c7] sm:$0xff] }
 0x119   : > { %v1657_v36 = vmul.f32 %v1641_v12, %v1593_v33  ;;  %2105 = verf.f32 %v1611_v47  ;;  %v1527_v1 = vadd.f32 %v1511_v63, %v1474_v13  ;;  %v1208_v59 = vadd.f32 %v1192_v38, %v1152_v44  ;;  %v3343_v63 = vld [vmem:[#allocation2 + $0x1e8] sm:$0xff]  ;;  %v1948_v13 = vld [vmem:[%s2478_s13 + $0xb0] sm:$0xff] }
 0x11a   : > { %1962 = vst [vmem:[%s2780_s11 + $0xa0] sm:$0xff] %v1722_v45  ;;  %v1422_v27 = vadd.f32 %v1406_v52, %v1369_v31  ;;  %v1248_v17 = vmul.f32 %v3010_v15, %v3319_v0  ;;  %v2104_v57 = vpop.eup %2103  ;;  %v1565_v39 = vmul.f32 %v3049_v49, %v3321_v46  ;;  %v1137_v33 = vmul.f32 %v2989_v3, %v1117_v62 }
 0x11b   : > { %v1691_v50 = vmul.f32 %v3216_v58, %v1657_v36  ;;  %v1580_v11 = vadd.f32 %v1564_v10, %v1527_v1  ;;  %v1642_v35 = vadd.f32 1.0, %v2104_v57  ;;  %v1301_v4 = vmul.f32 %v3023_v32, %v3223_v30 }
 0x11c   : > { %v1475_v28 = vadd.f32 %v1459_v24, %v1422_v27  ;;  %v1264_v8 = vadd.f32 %v1248_v17, %v1208_v59  ;;  %v1153_v26 = vadd.f32 %v3082_v14, %v1137_v33  ;;  %v1193_v53 = vmul.f32 %v3003_v25, %v3285_v60  ;;  %v3366_v24 = vld [vmem:[#allocation2 + $0x1f0] sm:$0xff] }
 0x11d   : > { %v1707_v34 = vadd.f32 %v3228_v43, %v1691_v50  ;;  %v1612_v5 = vmul.f32 0.70710677, %v1580_v11  ;;  %v1658_v41 = vmul.f32 %v1642_v35, %v1594_v21  ;;  %v1354_v30 = vmul.f32 %v3027_v18, %v3287_v56  ;;  %v3355_v21 = vld [vmem:[#allocation2 + $0x1e9] sm:$0xff] }
 0x11e   : > { %v1528_v20 = vadd.f32 %v1512_v9, %v1475_v28  ;;  %v1317_v10 = vadd.f32 %v1301_v4, %v1264_v8  ;;  %v1209_v6 = vadd.f32 %v1193_v53, %v1153_v26  ;;  %v1249_v54 = vmul.f32 %v3010_v15, %v3340_v51  ;;  %v1230_v50 = vld [vmem:[#allocation2 + $0x207] sm:$0xff]  ;;  %v3381_v26 = vld [vmem:[#allocation2 + $0x1f1] sm:$0xff] }
 0x11f   : > { %v1723_v42 = vadd.f32 %v1947_v55, %v1707_v34  ;;  %2107 = verf.f32 %v1612_v5  ;;  %v1692_v22 = vmul.f32 %v3216_v58, %v1658_v41  ;;  %v1407_v60 = vmul.f32 %v3029_v29, %v3343_v63 }
 0x120   : > { %v1581_v12 = vadd.f32 %v1565_v39, %v1528_v20  ;;  %v1370_v47 = vadd.f32 %v1354_v30, %v1317_v10  ;;  %v1595_v52 = vmul.f32 0.5, %v1579_v40  ;;  %v1460_v62 = vmul.f32 %v3041_v2, %v3235_v37  ;;  %v1119_v39 = vld [vmem:[#allocation2 + $0x1cf] sm:$0xff] }
 0x121   : > { %1963 = vst [vmem:[%s2780_s11 + $0xa8] sm:$0xff] %v1723_v42  ;;  %v1265_v45 = vadd.f32 %v1249_v54, %v1209_v6  ;;  %v1302_v31 = vmul.f32 %v3023_v32, %v3256_v48  ;;  %v1708_v44 = vadd.f32 %v3228_v43, %v1692_v22  ;;  %v1513_v1 = vmul.f32 %v3043_v61, %v3295_v7  ;;  %v1949_v54 = vld [vmem:[%s2478_s13 + $0xb8] sm:$0xff] }
 0x122   : > { %v1613_v38 = vmul.f32 0.70710677, %v1581_v12  ;;  %v1423_v36 = vadd.f32 %v1407_v60, %v1370_v47  ;;  %v1566_v40 = vmul.f32 %v3049_v49, %v3355_v21  ;;  %v1355_v37 = vmul.f32 %v3027_v18, %v3308_v23  ;;  %v3393_v60 = vld [vmem:[#allocation2 + $0x208] sm:$0xff] }
 0x123   : > { %v2106_v27 = vpop.eup %2105  ;;  %v1318_v9 = vadd.f32 %v1302_v31, %v1265_v45  ;;  %v1138_v48 = vmul.f32 %v2989_v3, %v1118_v19  ;;  %v1724_v59 = vadd.f32 %v1948_v13, %v1708_v44  ;;  %v1408_v55 = vmul.f32 %v3029_v29, %v3366_v24  ;;  %v3398_v44 = vld [vmem:[#allocation2 + $0x209] sm:$0xff] }
 0x124   : > { %v1643_v17 = vadd.f32 1.0, %v2106_v27  ;;  %2109 = verf.f32 %v1613_v38  ;;  %v1476_v57 = vadd.f32 %v1460_v62, %v1423_v36  ;;  %v1194_v28 = vmul.f32 %v3003_v25, %v3319_v0 }
 0x125   : > { %v1371_v33 = vadd.f32 %v1355_v37, %v1318_v9  ;;  %v1154_v35 = vadd.f32 %v3082_v14, %v1138_v48  ;;  %1964 = vst [vmem:[%s2780_s11 + $0xb0] sm:$0xff] %v1724_v59  ;;  %v1596_v4 = vmul.f32 0.5, %v1580_v11  ;;  %v1461_v5 = vmul.f32 %v3041_v2, %v3263_v16  ;;  %v1120_v9 = vld [vmem:[#allocation2 + $0x1e7] sm:$0xff] }
 0x126   : > { %v1659_v8 = vmul.f32 %v1643_v17, %v1595_v52  ;;  %v1529_v34 = vadd.f32 %v1513_v1, %v1476_v57  ;;  %v1514_v41 = vmul.f32 %v3043_v61, %v3321_v46  ;;  %v1250_v10 = vmul.f32 %v3010_v15, %v1230_v50 }
 0x127   : > { %v1424_v53 = vadd.f32 %v1408_v55, %v1371_v33  ;;  %v1210_v20 = vadd.f32 %v1194_v28, %v1154_v35  ;;  %v1597_v0 = vmul.f32 0.5, %v1581_v12  ;;  %v1139_v6 = vmul.f32 %v2989_v3, %v1119_v39  ;;  %v1950_v35 = vld [vmem:[%s2478_s13 + $0xc0] sm:$0xff] }
 0x128   : > { %v1693_v30 = vmul.f32 %v3216_v58, %v1659_v8  ;;  %v1582_v42 = vadd.f32 %v1566_v40, %v1529_v34  ;;  %v1567_v16 = vmul.f32 %v3049_v49, %v3381_v26  ;;  %v1303_v47 = vmul.f32 %v3023_v32, %v3287_v56  ;;  %v1231_v56 = vld [vmem:[#allocation2 + $0x20f] sm:$0xff]  ;;  %v1232_v34 = vld [vmem:[#allocation2 + $0x227] sm:$0xff] }
 0x129   : > { %v2108_v11 = vpop.eup %2107  ;;  %v1477_v19 = vadd.f32 %v1461_v5, %v1424_v53  ;;  %v1266_v22 = vadd.f32 %v1250_v10, %v1210_v20  ;;  %v1356_v12 = vmul.f32 %v3027_v18, %v3343_v63  ;;  %v1155_v38 = vadd.f32 %v3082_v14, %v1139_v6 }
 0x12a   : > { %v1709_v13 = vadd.f32 %v3228_v43, %v1693_v30  ;;  %v1644_v52 = vadd.f32 1.0, %v2108_v11  ;;  %v1614_v62 = vmul.f32 0.70710677, %v1582_v42  ;;  %v1195_v36 = vmul.f32 %v3003_v25, %v3340_v51 }
 0x12b   : > { %v1530_v45 = vadd.f32 %v1514_v41, %v1477_v19  ;;  %v1319_v31 = vadd.f32 %v1303_v47, %v1266_v22  ;;  %v1409_v40 = vmul.f32 %v3029_v29, %v3393_v60  ;;  %v1462_v59 = vmul.f32 %v3041_v2, %v3295_v7  ;;  %v3421_v41 = vld [vmem:[#allocation2 + $0x210] sm:$0xff] }
 0x12c   : > { %v1725_v1 = vadd.f32 %v1949_v54, %v1709_v13  ;;  %v1660_v27 = vmul.f32 %v1644_v52, %v1596_v4  ;;  %2111 = verf.f32 %v1614_v62  ;;  %v1211_v17 = vadd.f32 %v1195_v36, %v1155_v38  ;;  %v1121_v54 = vld [vmem:[#allocation2 + $0x1ef] sm:$0xff] }
 0x12d   : > { %v3405_v37 = vadd.f32 %v1567_v16, %v1530_v45  ;;  %v1372_v48 = vadd.f32 %v1356_v12, %v1319_v31  ;;  %v1515_v39 = vmul.f32 %v3043_v61, %v3355_v21  ;;  %v1568_v33 = vmul.f32 %v3049_v49, %v3398_v44 }
 0x12e   : > { %v2110_v57 = vpop.eup %2109  ;;  %1965 = vst [vmem:[%s2780_s11 + $0xb8] sm:$0xff] %v1725_v1  ;;  %v1694_v51 = vmul.f32 %v3216_v58, %v1660_v27  ;;  %v1251_v55 = vmul.f32 %v3010_v15, %v1231_v56  ;;  %v1304_v7 = vmul.f32 %v3023_v32, %v3308_v23  ;;  %v1140_v20 = vmul.f32 %v2989_v3, %v1120_v9  ;;  %v1233_v27 = vld [vmem:[#allocation2 + $0x22f] sm:$0xff] }
 0x12f   : > { %v1645_v28 = vadd.f32 1.0, %v2110_v57  ;;  %v1615_v8 = vmul.f32 0.70710677, %v3405_v37  ;;  %v1425_v4 = vadd.f32 %v1409_v40, %v1372_v48  ;;  %v1196_v10 = vmul.f32 %v3003_v25, %v1230_v50 }
 0x130   : > { %v1710_v5 = vadd.f32 %v3228_v43, %v1694_v51  ;;  %v1267_v53 = vadd.f32 %v1251_v55, %v1211_v17  ;;  %v1357_v11 = vmul.f32 %v3027_v18, %v3366_v24  ;;  %v1156_v16 = vadd.f32 %v3082_v14, %v1140_v20 }
 0x131   : > { %v1661_v30 = vmul.f32 %v1645_v28, %v1597_v0  ;;  %2113 = verf.f32 %v1615_v8  ;;  %v1478_v6 = vadd.f32 %v1462_v59, %v1425_v4  ;;  %v1252_v22 = vmul.f32 %v3010_v15, %v1232_v34  ;;  %v1951_v0 = vld [vmem:[%s2478_s13 + $0xc8] sm:$0xff] }
 0x132   : > { %v1726_v23 = vadd.f32 %v1950_v35, %v1710_v5  ;;  %v1320_v19 = vadd.f32 %v1304_v7, %v1267_v53  ;;  %v1598_v13 = vmul.f32 0.5, %v1582_v42  ;;  %v1410_v50 = vmul.f32 %v3029_v29, %v3421_v41  ;;  %v1952_v53 = vld [vmem:[%s2478_s13 + $0xd0] sm:$0xff] }
 0x133   : > { %v1695_v47 = vmul.f32 %v3216_v58, %v1661_v30  ;;  %v1531_v52 = vadd.f32 %v1515_v39, %v1478_v6  ;;  %v1463_v12 = vmul.f32 %v3041_v2, %v3321_v46  ;;  %v1516_v45 = vmul.f32 %v3043_v61, %v3381_v26  ;;  %v1549_v39 = vld [vmem:[#allocation2 + $0x211] sm:$0xff]  ;;  %v1550_v6 = vld [vmem:[#allocation2 + $0x229] sm:$0xff] }
 0x134   : > { %1966 = vst [vmem:[%s2780_s11 + $0xc0] sm:$0xff] %v1726_v23  ;;  %v1373_v62 = vadd.f32 %v1357_v11, %v1320_v19  ;;  %v1212_v31 = vadd.f32 %v1196_v10, %v1156_v16  ;;  %v1305_v42 = vmul.f32 %v3023_v32, %v3343_v63  ;;  %v1141_v1 = vmul.f32 %v2989_v3, %v1121_v54 }
 0x135   : > { %v1711_v38 = vadd.f32 %v3228_v43, %v1695_v47  ;;  %v1584_v36 = vadd.f32 %v1568_v33, %v1531_v52  ;;  %v1358_v46 = vmul.f32 %v3027_v18, %v3393_v60  ;;  %v1197_v59 = vmul.f32 %v3003_v25, %v1231_v56  ;;  %v2127_v33 = vld [vmem:[#allocation2 + $0x8] sm:$0xff] }
 0x136   : > { %v2112_v40 = vpop.eup %2111  ;;  %v1426_v9 = vadd.f32 %v1410_v50, %v1373_v62  ;;  %v1268_v48 = vadd.f32 %v1252_v22, %v1212_v31  ;;  %v1411_v55 = vmul.f32 %v2127_v33, %v3029_v29  ;;  %v1157_v35 = vadd.f32 %v3082_v14, %v1141_v1  ;;  %v1551_v31 = vld [vmem:[#allocation2 + $0x231] sm:$0xff] }
 0x137   : > { %v1727_v17 = vadd.f32 %v1951_v0, %v1711_v38  ;;  %v1646_v57 = vadd.f32 1.0, %v2112_v40  ;;  %v1616_v51 = vmul.f32 0.70710677, %v1584_v36  ;;  %v1253_v28 = vmul.f32 %v3010_v15, %v1233_v27  ;;  %v2129_v40 = vld [vmem:[#allocation6 + $0x8] ss:$0 sm:$0xff] }
 0x138   : > { %v1479_v63 = vadd.f32 %v1463_v12, %v1426_v9  ;;  %v1321_v3 = vadd.f32 %v1305_v42, %v1268_v48  ;;  %v1569_v25 = vmul.f32 %v3049_v49, %v1549_v39  ;;  %v1213_v4 = vadd.f32 %v1197_v59, %v1157_v35 }
 0x139   : > { %1967 = vst [vmem:[%s2780_s11 + $0xc8] sm:$0xff] %v1727_v17  ;;  %v1662_v8 = vmul.f32 %v1646_v57, %v1598_v13  ;;  %2115 = verf.f32 %v1616_v51  ;;  %v1599_v29 = vmul.f32 0.5, %v3405_v37  ;;  %v1464_v5 = vmul.f32 %v3041_v2, %v3355_v21 }
 0x13a   : > { %v1532_v60 = vadd.f32 %v1516_v45, %v1479_v63  ;;  %v1374_v56 = vadd.f32 %v1358_v46, %v1321_v3  ;;  %v1269_v10 = vadd.f32 %v1253_v28, %v1213_v4  ;;  %v1306_v11 = vmul.f32 %v3023_v32, %v3366_v24  ;;  %v1953_v32 = vld [vmem:[%s2478_s13 + $0xd8] sm:$0xff]  ;;  %v1955_v63 = vld [vmem:[%s2478_s13 + $0xe8] sm:$0xff] }
 0x13b   : > { %v2114_v7 = vpop.eup %2113  ;;  %v1696_v34 = vmul.f32 %v3216_v58, %v1662_v8  ;;  %v1517_v37 = vmul.f32 %v3043_v61, %v3398_v44  ;;  %v1359_v22 = vmul.f32 %v3027_v18, %v3421_v41  ;;  %v1570_v52 = vmul.f32 %v3049_v49, %v1550_v6  ;;  %v2128_v49 = vld [vmem:[#allocation6 + $0x5] ss:$0 sm:$0xff] }
 0x13c   : > { %v1647_v14 = vadd.f32 1.0, %v2114_v7  ;;  %v1585_v20 = vadd.f32 %v1569_v25, %v1532_v60  ;;  %v1427_v15 = vadd.f32 %v1411_v55, %v1374_v56  ;;  %v1322_v16 = vadd.f32 %v1306_v11, %v1269_v10  ;;  %v1956_v56 = vld [vmem:[%s2478_s13 + $0xf0] sm:$0xff] }
 0x13d   : > { %v1712_v30 = vadd.f32 %v3228_v43, %v1696_v34  ;;  %v1465_v44 = vmul.f32 %v3041_v2, %v3381_v26  ;;  %v1600_v41 = vmul.f32 0.5, %v1584_v36  ;;  %v1518_v42 = vmul.f32 %v2128_v49, %v1549_v39  ;;  %v1954_v2 = vld [vmem:[%s2478_s13 + $0xe0] sm:$0xff] }
 0x13e   : > { %v1663_v54 = vmul.f32 %v1647_v14, %v1599_v29  ;;  %v1617_v23 = vmul.f32 0.70710677, %v1585_v20  ;;  %v1480_v19 = vadd.f32 %v1464_v5, %v1427_v15  ;;  %v1375_v24 = vadd.f32 %v1359_v22, %v1322_v16 }
 0x13f   : > { %v1728_v21 = vadd.f32 %v1952_v53, %v1712_v30  ;;  %v1571_v9 = vmul.f32 %v2129_v40, %v1551_v31  ;;  %v1601_v59 = vmul.f32 0.5, %v1585_v20  ;;  %v1957_v20 = vld [vmem:[%s2478_s13 + $0xf8] sm:$0xff]  ;;  %s2192_s13 = sshll.u32 %s2281_s21, 4  ;;  %s2193_s13 = int_to_ptr.vmem [resolvable:$false] %s2192_s13 }
 0x140   : > { %v1697_v47 = vmul.f32 %v3216_v58, %v1663_v54  ;;  %2117 = verf.f32 %v1617_v23  ;;  %v1533_v13 = vadd.f32 %v1517_v37, %v1480_v19  ;;  %v1428_v61 = vadd.f32 %v1411_v55, %v1375_v24  ;;  %s2194_s16 = scalar_lea.vmem %s2193_s13, 8192  ;;  %p2195_p12 = scmp.lt.s32.totalorder %s3492_s28, %s2193_s13 }
 0x141   : > { %1968 = vst [vmem:[%s2780_s11 + $0xd0] sm:$0xff] %v1728_v21  ;;  %p2196_p11 = scmp.lt.s32.totalorder %s2194_s16, %s2188_s14 }
 0x142   : > { %v1713_v50 = vadd.f32 %v3228_v43, %v1697_v47  ;;  %v1586_v0 = vadd.f32 %v1570_v52, %v1533_v13  ;;  %v1481_v38 = vadd.f32 %v1465_v44, %v1428_v61 }
 0x143   : > { %v2116_v62 = vpop.eup %2115  ;;  %p2197_p0 = por %p2196_p11, %p2195_p12 }
 0x144   : > { %v1729_v18 = vadd.f32 %v1953_v32, %v1713_v50  ;;  %v1648_v12 = vadd.f32 1.0, %v2116_v62  ;;  %v1618_v45 = vmul.f32 0.70710677, %v1586_v0  ;;  %v1534_v27 = vadd.f32 %v1518_v42, %v1481_v38 }
 0x145   : > { %v1602_v35 = vmul.f32 0.5, %v1586_v0  ;;  %p2198_p5 = pnand %p2197_p0, %p2191_p8 }
 0x146   : > { %1969 = vst [vmem:[%s2780_s11 + $0xd8] sm:$0xff] %v1729_v18  ;;  %v1664_v1 = vmul.f32 %v1648_v12, %v1600_v41  ;;  %2119 = verf.f32 %v1618_v45  ;;  %v1587_v26 = vadd.f32 %v1571_v9, %v1534_v27 }
 0x148   : > { %v1698_v48 = vmul.f32 %v3216_v58, %v1664_v1  ;;  %v1619_v57 = vmul.f32 0.70710677, %v1587_v26  ;;  %v1603_v34 = vmul.f32 0.5, %v1587_v26 }
 0x14a   : > { %v2118_v46 = vpop.eup %2117  ;;  %v1714_v36 = vadd.f32 %v3228_v43, %v1698_v48  ;;  %2121 = verf.f32 %v1619_v57 }
 0x14b   : > { %v1649_v17 = vadd.f32 1.0, %v2118_v46 }
 0x14c   : > { %v1730_v51 = vadd.f32 %v1954_v2, %v1714_v36 }
 0x14d   : > { %v1665_v39 = vmul.f32 %v1649_v17, %v1601_v59 }
 0x14e   : > { %1970 = vst [vmem:[%s2780_s11 + $0xe0] sm:$0xff] %v1730_v51 }
 0x14f   : > { %v1699_v33 = vmul.f32 %v3216_v58, %v1665_v39 }
 0x150   : > { %v2120_v55 = vpop.eup %2119 }
 0x151   : > { %v1715_v3 = vadd.f32 %v3228_v43, %v1699_v33  ;;  %v1650_v28 = vadd.f32 1.0, %v2120_v55 }
 0x153   : > { %v1731_v8 = vadd.f32 %v1955_v63, %v1715_v3  ;;  %v1666_v60 = vmul.f32 %v1650_v28, %v1602_v35 }
 0x154   : > { %v2122_v4 = vpop.eup %2121 }
 0x155   : > { %1971 = vst [vmem:[%s2780_s11 + $0xe8] sm:$0xff] %v1731_v8  ;;  %v1700_v25 = vmul.f32 %v3216_v58, %v1666_v60  ;;  %v1651_v29 = vadd.f32 1.0, %v2122_v4 }
 0x157   : > { %v1716_v7 = vadd.f32 %v3228_v43, %v1700_v25  ;;  %v1667_v53 = vmul.f32 %v1651_v29, %v1603_v34 }
 0x159   : > { %v1732_v5 = vadd.f32 %v1956_v56, %v1716_v7  ;;  %v1701_v14 = vmul.f32 %v3216_v58, %v1667_v53 }
 0x15b   : > { %1972 = vst [vmem:[%s2780_s11 + $0xf0] sm:$0xff] %v1732_v5  ;;  %v1717_v15 = vadd.f32 %v3228_v43, %v1701_v14 }
 0x15d   : > { %v1733_v10 = vadd.f32 %v1957_v20, %v1717_v15 }
 0x15f   : > { %1973 = vst [vmem:[%s2780_s11 + $0xf8] sm:$0xff] %v1733_v10 }
 0x160   : > { %2201 = shalt.err (!%p2198_p5)
}
 0x161   : > { %s2202_s11 = scalar_lea.hbm %s3490_s25, 4096  ;;  %s2206_s27 = scalar_lea.hbm %s3547_s5, 8192 }
 0x162   : > { %p2203_p9 = scmp.ne.s32.totalorder %s3490_s25, %s2202_s11  ;;  %p2207_p3 = scmp.lt.u32.totalorder %s3490_s25, %s3547_s5 }
 0x163   : > { %p2208_p7 = scmp.lt.u32.totalorder %s2206_s27, %s2202_s11  ;;  %p2210_p4 = scmp.lt.u32.totalorder %s2202_s11, %s3490_s25 }
 0x164   : > { %p2204_p1 = pnand %p2203_p9, %p2413_p10 }
 0x165   : > { %p2209_p13 = por %p2208_p7, %p2207_p3 }
 0x166   : > { %p2205_p2 = pneg %p2204_p1 }
 0x167   : > { %p2211_p6 = por %p2210_p4, %p2209_p13 }
 0x169   : > { %p2212_p8 = pnand %p2211_p6, %p2205_p2 }
 0x16b   : > { %2215 = shalt.err (!%p2212_p8)
}
 0x16c   : > { %s2282_s30 = smov 128   ;;  %s2283_s24 = smov 8  }
 0x16d   : > { %1987 = dma.vmem_to_hbm [thread:$0]  (%p2413_p10), %s3492_s28, 4096, %s3490_s25, %s1752_s10, %s2282_s30, %s2282_s30, %s2283_s24  }
 0x16e PF: > { %s1781_s14 = sand.u32 1, %s2254_s18   ;;  %p3570_p12 = scmp.ne.s32.totalorder %s3557_s29, 0 }
 0x16f   : > { %p3571_p11 = scmp.ge.s32.totalorder %s2274_s23, 2  ;;  %s1782_s21 = scalar_lea.sflag [#allocation5], %s1781_s14 }
 0x171   : > { %p1998_p0 = pnand %p3571_p11, %p3570_p12 }
 0x173   : > { %2249 = dma.done.wait (!%p1998_p0), %s1782_s21, 4096  }
 0x174   : > { %2251 = vsyncadd (!%p1998_p0), %s1782_s21, 4294963200  ;;  %s22_s23 = sadd.s32 1, %s2274_s23   ;;  %s3572_s18 = smov %s2258_s19 }
 0x175   : > { %p19_p5 = scmp.ge.s32.totalorder %s22_s23, 4   ;;  %s3573_s19 = smov %s2262_s20 }
 0x176   : > { %s3574_s20 = smov %s2422_s15  ;;  %s3575_s21 = smov %s2270_s22 }
 0x177   : > { %s3576_s22 = smov %s3578_s9  ;;  %21 = sbr.rel (!%p19_p5) target bundleno = 7 (0x7), region = 111 }
 0x17e   :  { %1787 = vsyncpa [#allocation4], 1 }
 0x17f   :  { %1789 = vsyncpa [#allocation4 + $0x1], 1 }
 0x180   :  { %1790 = vsyncpa [#allocation7], 1 }
 0x181   :  { %1791 = vsyncpa [#allocation5], 1 }
 0x182   :  { %1793 = vsyncpa [#allocation5 + $0x1], 1 }

</bundles_post_ra>
